<compile_context>
chip_gen: v7x
topology: tpu7x:2x2x1
jax: 0.10.0
libtpu: 0.0.40
codegen_flags: <defaults>
</compile_context>

<pallas_src>
import functools

import jax
import jax.numpy as jnp
import numpy as np
from jax.experimental import pallas as pl
from jax.experimental.pallas import tpu as pltpu


def _round_up(v, m):
    return ((v + m - 1) // m) * m


# ----------------------------------------------------------------------------
# Fused kernel: one batch element per grid step.
# ----------------------------------------------------------------------------
def _simple_cnn_kernel(x_ref, w1_ref, b1_ref, w2_ref, b2_ref,
                       wf1_ref, bf1_ref, wf2_ref, bf2_ref, o_ref, *, n):
    """x_ref : (1, n+9, (n+4)*6)   height-extended, width-padded NHWC rows
                 (row j = image row j-4, col wp*6+ci = padded width wp, chan ci)
       w1    : (5, (n+4)*6, 2*pad_p)  conv1 row-Toeplitz; even out cols in lanes
                 [0, cols_p), odd out cols in lanes [pad_p, pad_p+cols_p)
       b1    : (1, cols_p)
       w2    : (3, cols_p, cols_2)  conv2 row-Toeplitz (width pad folded in)
       b2    : (1, cols_2)
       wf1   : (n//2, cols_2, 128)  fc1 weight, one slab per conv2 output row
       bf1   : (1, 128)    wf2: (128, bd)    bf2: (1, bd)
       o_ref : (1, 1, bd)
       with cols_p = (n//2)*12, pad_p = round_up(cols_p,128), cols_2 = (n//2)*24
    """
    H2 = n // 2
    cols_p = H2 * 12          # pooled row width  (96 for n=16)
    pad_p = _round_up(cols_p, 128)
    He = n + 5                # extended conv1 rows: conv rows -2 .. n+2
    Hs = n + 4                # rows of the row-pooled map

    x = x_ref[0]                                        # (n+9, (n+4)*6)

    # ---- conv1 (no bias yet): 5 Toeplitz dots, even|odd packed along lanes ---
    acc = jnp.zeros((He, 2 * pad_p), jnp.float32)
    for kh in range(5):
        acc = acc + jnp.dot(x[kh:kh + He, :], w1_ref[kh],
                            preferred_element_type=jnp.float32)

    # ---- 2x2 max-pool + bias + ReLU (relu/maxpool commute; bias is per-chan) -
    wmax = jnp.maximum(acc[:, :cols_p], acc[:, pad_p:pad_p + cols_p])  # width
    rmax = jnp.maximum(wmax[0:Hs, :], wmax[1:Hs + 1, :])               # height
    pooled = jnp.maximum(rmax + b1_ref[...], 0.0)       # (Hs, cols_p)
    # pooled[2 + 2*ho, wo*12 + c] == maxpool(relu(conv1))[ho, wo, c]

    # ---- conv2 (+bias, ReLU): row-Toeplitz over 3 taps, sparse-row layout ----
    row_ids = jax.lax.broadcasted_iota(jnp.int32, (n, cols_p), 0)
    acc2 = jnp.dot(pooled[2:2 + n, :], w2_ref[1],
                   preferred_element_type=jnp.float32)
    s0 = jnp.where(row_ids >= 2, pooled[0:n, :], 0.0)          # top zero pad
    acc2 = acc2 + jnp.dot(s0, w2_ref[0], preferred_element_type=jnp.float32)
    s2 = jnp.where(row_ids < n - 2, pooled[4:4 + n, :], 0.0)   # bottom zero pad
    acc2 = acc2 + jnp.dot(s2, w2_ref[2], preferred_element_type=jnp.float32)
    acc2 = jnp.maximum(acc2 + b2_ref[...], 0.0)
    # acc2[2*h2, w2*24 + c2] == relu(conv2)[h2, w2, c2]  (odd rows unused)

    # ---- fc1 + ReLU (flatten permutation folded into wf1) --------------------
    h = bf1_ref[...]                                    # (1, 128)
    for h2 in range(H2):
        h = h + jnp.dot(acc2[2 * h2:2 * h2 + 1, :], wf1_ref[h2],
                        preferred_element_type=jnp.float32)
    h = jnp.maximum(h, 0.0)

    # ---- fc2 + L2 normalize (F.normalize, eps=1e-12) --------------------------
    z = jnp.dot(h, wf2_ref[...], preferred_element_type=jnp.float32) + bf2_ref[...]
    nrm = jnp.sqrt(jnp.sum(z * z, axis=-1, keepdims=True))
    o_ref[0] = (z / jnp.maximum(nrm, 1e-12)).astype(o_ref.dtype)


def simple_cnn_forward(x_nchw, kp, n):
    N = x_nchw.shape[0]
    H2 = n // 2
    cols_p = H2 * 12
    pad_p = _round_up(cols_p, 128)
    cols_2 = H2 * 24
    bdim = kp["fc2_w"].shape[1]

    # Input glue (tiny, fused by XLA): NCHW -> NHWC, pad H by (4,5) / W by (2,2),
    # flatten each padded row to (width*channels) for the row-Toeplitz matmuls.
    x = jnp.transpose(x_nchw, (0, 2, 3, 1))
    x = jnp.pad(x, ((0, 0), (4, 5), (2, 2), (0, 0)))
    x = x.reshape(N, n + 9, (n + 4) * 6)

    kern = functools.partial(_simple_cnn_kernel, n=n)
    const2 = lambda b: (0, 0)
    const3 = lambda b: (0, 0, 0)
    out = pl.pallas_call(
        kern,
        grid=(N,),
        in_specs=[
            pl.BlockSpec((1, n + 9, (n + 4) * 6), lambda b: (b, 0, 0)),
            pl.BlockSpec((5, (n + 4) * 6, 2 * pad_p), const3),
            pl.BlockSpec((1, cols_p), const2),
            pl.BlockSpec((3, cols_p, cols_2), const3),
            pl.BlockSpec((1, cols_2), const2),
            pl.BlockSpec((H2, cols_2, 128), const3),
            pl.BlockSpec((1, 128), const2),
            pl.BlockSpec((128, bdim), const2),
            pl.BlockSpec((1, bdim), const2),
        ],
        out_specs=pl.BlockSpec((1, 1, bdim), lambda b: (b, 0, 0)),
        out_shape=jax.ShapeDtypeStruct((N, 1, bdim), jnp.float32),
        compiler_params=pltpu.CompilerParams(
            dimension_semantics=("parallel",)),
    )(x, kp["conv1_w"], kp["conv1_b"],
      kp["conv2_w"], kp["conv2_b"], kp["fc1_w"], kp["fc1_b"],
      kp["fc2_w"], kp["fc2_b"])
    return out.reshape(N, bdim)


# ----------------------------------------------------------------------------
# Host-side (one-time) weight re-layouts: row-Toeplitz matrices etc.
# ----------------------------------------------------------------------------
def _conv1_toeplitz_merged(w, n):
    # w: (12, 6, 5, 5) OIHW. Returns (5, (n+4)*6, 2*pad_p):
    #   M[kh, wp*6+ci, wo*12+co]         = w[co, ci, kh, wp - 2*wo]        (even)
    #   M[kh, wp*6+ci, pad_p + wo*12+co] = w[co, ci, kh, wp - (2*wo+1)]    (odd)
    Cout, Cin, KH, KW = w.shape
    Wp, Wo = n + 4, n // 2
    cols_p = Wo * Cout
    pad_p = _round_up(cols_p, 128)
    M = np.zeros((KH, Wp * Cin, 2 * pad_p), np.float32)
    wt = np.transpose(w, (1, 0, 2, 3))                  # [ci, co, kh, kw]
    for kh in range(KH):
        for wo in range(Wo):
            for kw in range(KW):
                pe = 2 * wo + kw
                po = 2 * wo + 1 + kw
                M[kh, pe * Cin:(pe + 1) * Cin,
                  wo * Cout:(wo + 1) * Cout] = wt[:, :, kh, kw]
                M[kh, po * Cin:(po + 1) * Cin,
                  pad_p + wo * Cout:pad_p + (wo + 1) * Cout] = wt[:, :, kh, kw]
    return M


def _conv2_toeplitz(w, n):
    # w: (24, 12, 3, 3) OIHW. Returns (3, (n//2)*12, (n//2)*24):
    #   M[kh, w1*12+c1, w2*24+c2] = w[c2, c1, kh, w1 - w2 + 1]  (width pad folded in)
    Cout, Cin, KH, KW = w.shape
    W2 = n // 2
    M = np.zeros((KH, W2 * Cin, W2 * Cout), np.float32)
    wt = np.transpose(w, (1, 0, 2, 3))
    for kh in range(KH):
        for w2 in range(W2):
            for kw in range(KW):
                w1 = w2 + kw - 1
                if 0 <= w1 < W2:
                    M[kh, w1 * Cin:(w1 + 1) * Cin,
                      w2 * Cout:(w2 + 1) * Cout] = wt[:, :, kh, kw]
    return M


def _fc1_rowwise(w, n):
    # w: (128, (n//2)^2 * 24), PyTorch flatten order (c2, h2, w2).
    # Returns (n//2, (n//2)*24, 128) with per-row column order (w2, c2).
    W2 = n // 2
    K = w.shape[0]
    w4 = w.reshape(K, 24, W2, W2)                       # [k, c2, h2, w2]
    return np.ascontiguousarray(np.transpose(w4, (2, 3, 1, 0))).reshape(W2, W2 * 24, K)


def make_params(key, n, bottleneck_dim=32):
    h2 = n // 2
    fc_in = h2 * h2 * 24
    ks = jax.random.split(key, 8)

    def init(k, shape, fan_in):
        return jax.random.normal(k, shape, jnp.float32) / jnp.sqrt(float(fan_in))

    torch_p = {
        "conv1_w": init(ks[0], (12, 6, 5, 5), 6 * 25),
        "conv1_b": init(ks[1], (12,), 6 * 25),
        "conv2_w": init(ks[2], (24, 12, 3, 3), 12 * 9),
        "conv2_b": init(ks[3], (24,), 12 * 9),
        "fc1_w": init(ks[4], (128, fc_in), fc_in),
        "fc1_b": init(ks[5], (128,), fc_in),
        "fc2_w": init(ks[6], (bottleneck_dim, 128), 128),
        "fc2_b": init(ks[7], (bottleneck_dim,), 128),
    }

    kernel_p = {
        "conv1_w": jnp.asarray(_conv1_toeplitz_merged(np.asarray(torch_p["conv1_w"]), n)),
        "conv1_b": jnp.tile(torch_p["conv1_b"], h2).reshape(1, h2 * 12),
        "conv2_w": jnp.asarray(_conv2_toeplitz(np.asarray(torch_p["conv2_w"]), n)),
        "conv2_b": jnp.tile(torch_p["conv2_b"], h2).reshape(1, h2 * 24),
        "fc1_w": jnp.asarray(_fc1_rowwise(np.asarray(torch_p["fc1_w"]), n)),
        "fc1_b": torch_p["fc1_b"].reshape(1, 128),
        "fc2_w": torch_p["fc2_w"].T,
        "fc2_b": torch_p["fc2_b"].reshape(1, bottleneck_dim),
    }
    return torch_p, kernel_p


# ----------------------------------------------------------------------------
# Pure-JAX reference (mirrors the PyTorch forward exactly, NCHW).
# ----------------------------------------------------------------------------
def reference_forward(x_nchw, tp):
    y = jax.lax.conv_general_dilated(x_nchw, tp["conv1_w"], (1, 1),
                                     ((2, 2), (2, 2)),
                                     dimension_numbers=("NCHW", "OIHW", "NCHW"))
    y = jnp.maximum(y + tp["conv1_b"][None, :, None, None], 0.0)
    y = jax.lax.reduce_window(y, -jnp.inf, jax.lax.max,
                              (1, 1, 2, 2), (1, 1, 2, 2), "VALID")
    y = jax.lax.conv_general_dilated(y, tp["conv2_w"], (1, 1),
                                     ((1, 1), (1, 1)),
                                     dimension_numbers=("NCHW", "OIHW", "NCHW"))
    y = jnp.maximum(y + tp["conv2_b"][None, :, None, None], 0.0)
    f = y.reshape(y.shape[0], -1)
    h = jnp.maximum(f @ tp["fc1_w"].T + tp["fc1_b"], 0.0)
    z = h @ tp["fc2_w"].T + tp["fc2_b"]
    nrm = jnp.sqrt(jnp.sum(z * z, axis=1, keepdims=True))
    return z / jnp.maximum(nrm, 1e-12)


if __name__ == "__main__":
    n = 16           # spatial size, as in SimpleCNN(n=16)
    batch = 2
    bottleneck = 32

    key = jax.random.PRNGKey(0)
    k_x, k_p = jax.random.split(key)
    x = jax.random.normal(k_x, (batch, 6, n, n), jnp.float32)   # NCHW input

    torch_params, kernel_params = make_params(k_p, n, bottleneck)

    out = jax.block_until_ready(simple_cnn_forward(x, kernel_params, n))
    ref = jax.block_until_ready(reference_forward(x, torch_params))

    assert out.shape == (batch, bottleneck)
    if not np.allclose(np.asarray(out), np.asarray(ref), atol=1e-3, rtol=1e-3):
        raise AssertionError("Pallas kernel output does not match reference")

    print("KERNEL_OK")
</pallas_src>

<mosaic_0001>
module attributes {stable_mosaic.version = 11 : i64} {
  func.func @_simple_cnn_kernel(%arg0: i32, %arg1: memref<1x25x120xf32, #tpu.memory_space<vmem>>, %arg2: memref<5x120x256xf32, #tpu.memory_space<vmem>>, %arg3: memref<1x96xf32, #tpu.memory_space<vmem>>, %arg4: memref<3x96x192xf32, #tpu.memory_space<vmem>>, %arg5: memref<1x192xf32, #tpu.memory_space<vmem>>, %arg6: memref<8x192x128xf32, #tpu.memory_space<vmem>>, %arg7: memref<1x128xf32, #tpu.memory_space<vmem>>, %arg8: memref<128x32xf32, #tpu.memory_space<vmem>>, %arg9: memref<1x32xf32, #tpu.memory_space<vmem>>, %arg10: memref<1x1x32xf32, #tpu.memory_space<vmem>>) attributes {dimension_semantics = [#tpu.dimension_semantics<parallel>], iteration_bounds = array<i64: 2>, scalar_prefetch = 0 : i64, scratch_operands = 0 : i64, tpu.core_type = #tpu.core_type<tc>, window_params = [{transform_indices = @transform_0, window_bounds = array<i64: 1, 25, 120>}, {pipeline_mode = #tpu.pipeline_mode<synchronous>, transform_indices = @transform_1, window_bounds = array<i64: 5, 120, 256>}, {pipeline_mode = #tpu.pipeline_mode<synchronous>, transform_indices = @transform_2, window_bounds = array<i64: 1, 96>}, {pipeline_mode = #tpu.pipeline_mode<synchronous>, transform_indices = @transform_3, window_bounds = array<i64: 3, 96, 192>}, {pipeline_mode = #tpu.pipeline_mode<synchronous>, transform_indices = @transform_4, window_bounds = array<i64: 1, 192>}, {pipeline_mode = #tpu.pipeline_mode<synchronous>, transform_indices = @transform_5, window_bounds = array<i64: 8, 192, 128>}, {pipeline_mode = #tpu.pipeline_mode<synchronous>, transform_indices = @transform_6, window_bounds = array<i64: 1, 128>}, {pipeline_mode = #tpu.pipeline_mode<synchronous>, transform_indices = @transform_7, window_bounds = array<i64: 128, 32>}, {pipeline_mode = #tpu.pipeline_mode<synchronous>, transform_indices = @transform_8, window_bounds = array<i64: 1, 32>}, {transform_indices = @transform_9, window_bounds = array<i64: 1, 1, 32>}]} {
    %c0 = arith.constant 0 : index
    %c0_0 = arith.constant 0 : index
    %c0_1 = arith.constant 0 : index
    %0 = vector.load %arg1[%c0, %c0_0, %c0_1] : memref<1x25x120xf32, #tpu.memory_space<vmem>>, vector<1x25x120xf32>
    %1 = vector.shape_cast %0 : vector<1x25x120xf32> to vector<25x120xf32>
    %cst = arith.constant 0.000000e+00 : f32
    %2 = vector.broadcast %cst : f32 to vector<21x256xf32>
    %3 = vector.extract_strided_slice %1 {offsets = [0, 0], sizes = [21, 120], strides = [1, 1]} : vector<25x120xf32> to vector<21x120xf32>
    %c0_2 = arith.constant 0 : index
    %c0_3 = arith.constant 0 : index
    %c0_4 = arith.constant 0 : index
    %4 = vector.load %arg2[%c0_2, %c0_3, %c0_4] : memref<5x120x256xf32, #tpu.memory_space<vmem>>, vector<1x120x256xf32>
    %5 = vector.shape_cast %4 : vector<1x120x256xf32> to vector<120x256xf32>
    %cst_5 = arith.constant dense<0.000000e+00> : vector<21x256xf32>
    %6 = tpu.matmul %3, %5, %cst_5 {dimension_numbers = #tpu.dot_dimension_numbers<[1], [0], [0], [1], [0, 0, 1, 1], [], []>} : vector<21x120xf32>, vector<120x256xf32>, vector<21x256xf32> -> vector<21x256xf32>
    %7 = arith.addf %2, %6 : vector<21x256xf32>
    %8 = vector.extract_strided_slice %1 {offsets = [1, 0], sizes = [21, 120], strides = [1, 1]} : vector<25x120xf32> to vector<21x120xf32>
    %c1 = arith.constant 1 : index
    %c0_6 = arith.constant 0 : index
    %c0_7 = arith.constant 0 : index
    %9 = vector.load %arg2[%c1, %c0_6, %c0_7] : memref<5x120x256xf32, #tpu.memory_space<vmem>>, vector<1x120x256xf32>
    %10 = vector.shape_cast %9 : vector<1x120x256xf32> to vector<120x256xf32>
    %cst_8 = arith.constant dense<0.000000e+00> : vector<21x256xf32>
    %11 = tpu.matmul %8, %10, %cst_8 {dimension_numbers = #tpu.dot_dimension_numbers<[1], [0], [0], [1], [0, 0, 1, 1], [], []>} : vector<21x120xf32>, vector<120x256xf32>, vector<21x256xf32> -> vector<21x256xf32>
    %12 = arith.addf %7, %11 : vector<21x256xf32>
    %13 = vector.extract_strided_slice %1 {offsets = [2, 0], sizes = [21, 120], strides = [1, 1]} : vector<25x120xf32> to vector<21x120xf32>
    %c2 = arith.constant 2 : index
    %c0_9 = arith.constant 0 : index
    %c0_10 = arith.constant 0 : index
    %14 = vector.load %arg2[%c2, %c0_9, %c0_10] : memref<5x120x256xf32, #tpu.memory_space<vmem>>, vector<1x120x256xf32>
    %15 = vector.shape_cast %14 : vector<1x120x256xf32> to vector<120x256xf32>
    %cst_11 = arith.constant dense<0.000000e+00> : vector<21x256xf32>
    %16 = tpu.matmul %13, %15, %cst_11 {dimension_numbers = #tpu.dot_dimension_numbers<[1], [0], [0], [1], [0, 0, 1, 1], [], []>} : vector<21x120xf32>, vector<120x256xf32>, vector<21x256xf32> -> vector<21x256xf32>
    %17 = arith.addf %12, %16 : vector<21x256xf32>
    %18 = vector.extract_strided_slice %1 {offsets = [3, 0], sizes = [21, 120], strides = [1, 1]} : vector<25x120xf32> to vector<21x120xf32>
    %c3 = arith.constant 3 : index
    %c0_12 = arith.constant 0 : index
    %c0_13 = arith.constant 0 : index
    %19 = vector.load %arg2[%c3, %c0_12, %c0_13] : memref<5x120x256xf32, #tpu.memory_space<vmem>>, vector<1x120x256xf32>
    %20 = vector.shape_cast %19 : vector<1x120x256xf32> to vector<120x256xf32>
    %cst_14 = arith.constant dense<0.000000e+00> : vector<21x256xf32>
    %21 = tpu.matmul %18, %20, %cst_14 {dimension_numbers = #tpu.dot_dimension_numbers<[1], [0], [0], [1], [0, 0, 1, 1], [], []>} : vector<21x120xf32>, vector<120x256xf32>, vector<21x256xf32> -> vector<21x256xf32>
    %22 = arith.addf %17, %21 : vector<21x256xf32>
    %23 = vector.extract_strided_slice %1 {offsets = [4, 0], sizes = [21, 120], strides = [1, 1]} : vector<25x120xf32> to vector<21x120xf32>
    %c4 = arith.constant 4 : index
    %c0_15 = arith.constant 0 : index
    %c0_16 = arith.constant 0 : index
    %24 = vector.load %arg2[%c4, %c0_15, %c0_16] : memref<5x120x256xf32, #tpu.memory_space<vmem>>, vector<1x120x256xf32>
    %25 = vector.shape_cast %24 : vector<1x120x256xf32> to vector<120x256xf32>
    %cst_17 = arith.constant dense<0.000000e+00> : vector<21x256xf32>
    %26 = tpu.matmul %23, %25, %cst_17 {dimension_numbers = #tpu.dot_dimension_numbers<[1], [0], [0], [1], [0, 0, 1, 1], [], []>} : vector<21x120xf32>, vector<120x256xf32>, vector<21x256xf32> -> vector<21x256xf32>
    %27 = arith.addf %22, %26 : vector<21x256xf32>
    %28 = vector.extract_strided_slice %27 {offsets = [0, 0], sizes = [21, 96], strides = [1, 1]} : vector<21x256xf32> to vector<21x96xf32>
    %29 = vector.extract_strided_slice %27 {offsets = [0, 128], sizes = [21, 96], strides = [1, 1]} : vector<21x256xf32> to vector<21x96xf32>
    %30 = arith.maximumf %28, %29 : vector<21x96xf32>
    %31 = vector.extract_strided_slice %30 {offsets = [0, 0], sizes = [20, 96], strides = [1, 1]} : vector<21x96xf32> to vector<20x96xf32>
    %32 = vector.extract_strided_slice %30 {offsets = [1, 0], sizes = [20, 96], strides = [1, 1]} : vector<21x96xf32> to vector<20x96xf32>
    %33 = arith.maximumf %31, %32 : vector<20x96xf32>
    %c0_18 = arith.constant 0 : index
    %c0_19 = arith.constant 0 : index
    %34 = vector.load %arg3[%c0_18, %c0_19] : memref<1x96xf32, #tpu.memory_space<vmem>>, vector<1x96xf32>
    %35 = vector.broadcast %34 : vector<1x96xf32> to vector<20x96xf32>
    %36 = arith.addf %33, %35 : vector<20x96xf32>
    %cst_20 = arith.constant 0.000000e+00 : f32
    %37 = vector.broadcast %cst_20 : f32 to vector<20x96xf32>
    %38 = arith.maximumf %36, %37 : vector<20x96xf32>
    %39 = tpu.iota {dimensions = array<i32: 0>} : vector<16x96xi32>
    %40 = vector.extract_strided_slice %38 {offsets = [2, 0], sizes = [16, 96], strides = [1, 1]} : vector<20x96xf32> to vector<16x96xf32>
    %c1_21 = arith.constant 1 : index
    %c0_22 = arith.constant 0 : index
    %c0_23 = arith.constant 0 : index
    %41 = vector.load %arg4[%c1_21, %c0_22, %c0_23] : memref<3x96x192xf32, #tpu.memory_space<vmem>>, vector<1x96x192xf32>
    %42 = vector.shape_cast %41 : vector<1x96x192xf32> to vector<96x192xf32>
    %cst_24 = arith.constant dense<0.000000e+00> : vector<16x192xf32>
    %43 = tpu.matmul %40, %42, %cst_24 {dimension_numbers = #tpu.dot_dimension_numbers<[1], [0], [0], [1], [0, 0, 1, 1], [], []>} : vector<16x96xf32>, vector<96x192xf32>, vector<16x192xf32> -> vector<16x192xf32>
    %c2_i32 = arith.constant 2 : i32
    %44 = vector.broadcast %c2_i32 : i32 to vector<16x96xi32>
    %45 = arith.cmpi sge, %39, %44 : vector<16x96xi32>
    %46 = vector.extract_strided_slice %38 {offsets = [0, 0], sizes = [16, 96], strides = [1, 1]} : vector<20x96xf32> to vector<16x96xf32>
    %cst_25 = arith.constant 0.000000e+00 : f32
    %47 = vector.broadcast %cst_25 : f32 to vector<16x96xf32>
    %48 = arith.select %45, %46, %47 : vector<16x96xi1>, vector<16x96xf32>
    %c0_26 = arith.constant 0 : index
    %c0_27 = arith.constant 0 : index
    %c0_28 = arith.constant 0 : index
    %49 = vector.load %arg4[%c0_26, %c0_27, %c0_28] : memref<3x96x192xf32, #tpu.memory_space<vmem>>, vector<1x96x192xf32>
    %50 = vector.shape_cast %49 : vector<1x96x192xf32> to vector<96x192xf32>
    %cst_29 = arith.constant dense<0.000000e+00> : vector<16x192xf32>
    %51 = tpu.matmul %48, %50, %cst_29 {dimension_numbers = #tpu.dot_dimension_numbers<[1], [0], [0], [1], [0, 0, 1, 1], [], []>} : vector<16x96xf32>, vector<96x192xf32>, vector<16x192xf32> -> vector<16x192xf32>
    %52 = arith.addf %43, %51 : vector<16x192xf32>
    %c14_i32 = arith.constant 14 : i32
    %53 = vector.broadcast %c14_i32 : i32 to vector<16x96xi32>
    %54 = arith.cmpi slt, %39, %53 : vector<16x96xi32>
    %55 = vector.extract_strided_slice %38 {offsets = [4, 0], sizes = [16, 96], strides = [1, 1]} : vector<20x96xf32> to vector<16x96xf32>
    %cst_30 = arith.constant 0.000000e+00 : f32
    %56 = vector.broadcast %cst_30 : f32 to vector<16x96xf32>
    %57 = arith.select %54, %55, %56 : vector<16x96xi1>, vector<16x96xf32>
    %c2_31 = arith.constant 2 : index
    %c0_32 = arith.constant 0 : index
    %c0_33 = arith.constant 0 : index
    %58 = vector.load %arg4[%c2_31, %c0_32, %c0_33] : memref<3x96x192xf32, #tpu.memory_space<vmem>>, vector<1x96x192xf32>
    %59 = vector.shape_cast %58 : vector<1x96x192xf32> to vector<96x192xf32>
    %cst_34 = arith.constant dense<0.000000e+00> : vector<16x192xf32>
    %60 = tpu.matmul %57, %59, %cst_34 {dimension_numbers = #tpu.dot_dimension_numbers<[1], [0], [0], [1], [0, 0, 1, 1], [], []>} : vector<16x96xf32>, vector<96x192xf32>, vector<16x192xf32> -> vector<16x192xf32>
    %61 = arith.addf %52, %60 : vector<16x192xf32>
    %c0_35 = arith.constant 0 : index
    %c0_36 = arith.constant 0 : index
    %62 = vector.load %arg5[%c0_35, %c0_36] : memref<1x192xf32, #tpu.memory_space<vmem>>, vector<1x192xf32>
    %63 = vector.broadcast %62 : vector<1x192xf32> to vector<16x192xf32>
    %64 = arith.addf %61, %63 : vector<16x192xf32>
    %cst_37 = arith.constant 0.000000e+00 : f32
    %65 = vector.broadcast %cst_37 : f32 to vector<16x192xf32>
    %66 = arith.maximumf %64, %65 : vector<16x192xf32>
    %c0_38 = arith.constant 0 : index
    %c0_39 = arith.constant 0 : index
    %67 = vector.load %arg7[%c0_38, %c0_39] : memref<1x128xf32, #tpu.memory_space<vmem>>, vector<1x128xf32>
    %68 = vector.extract_strided_slice %66 {offsets = [0, 0], sizes = [1, 192], strides = [1, 1]} : vector<16x192xf32> to vector<1x192xf32>
    %c0_40 = arith.constant 0 : index
    %c0_41 = arith.constant 0 : index
    %c0_42 = arith.constant 0 : index
    %69 = vector.load %arg6[%c0_40, %c0_41, %c0_42] : memref<8x192x128xf32, #tpu.memory_space<vmem>>, vector<1x192x128xf32>
    %70 = vector.shape_cast %69 : vector<1x192x128xf32> to vector<192x128xf32>
    %cst_43 = arith.constant dense<0.000000e+00> : vector<1x128xf32>
    %71 = tpu.matmul %68, %70, %cst_43 {dimension_numbers = #tpu.dot_dimension_numbers<[1], [0], [0], [1], [0, 0, 1, 1], [], []>} : vector<1x192xf32>, vector<192x128xf32>, vector<1x128xf32> -> vector<1x128xf32>
    %72 = arith.addf %67, %71 : vector<1x128xf32>
    %73 = vector.extract_strided_slice %66 {offsets = [2, 0], sizes = [1, 192], strides = [1, 1]} : vector<16x192xf32> to vector<1x192xf32>
    %c1_44 = arith.constant 1 : index
    %c0_45 = arith.constant 0 : index
    %c0_46 = arith.constant 0 : index
    %74 = vector.load %arg6[%c1_44, %c0_45, %c0_46] : memref<8x192x128xf32, #tpu.memory_space<vmem>>, vector<1x192x128xf32>
    %75 = vector.shape_cast %74 : vector<1x192x128xf32> to vector<192x128xf32>
    %cst_47 = arith.constant dense<0.000000e+00> : vector<1x128xf32>
    %76 = tpu.matmul %73, %75, %cst_47 {dimension_numbers = #tpu.dot_dimension_numbers<[1], [0], [0], [1], [0, 0, 1, 1], [], []>} : vector<1x192xf32>, vector<192x128xf32>, vector<1x128xf32> -> vector<1x128xf32>
    %77 = arith.addf %72, %76 : vector<1x128xf32>
    %78 = vector.extract_strided_slice %66 {offsets = [4, 0], sizes = [1, 192], strides = [1, 1]} : vector<16x192xf32> to vector<1x192xf32>
    %c2_48 = arith.constant 2 : index
    %c0_49 = arith.constant 0 : index
    %c0_50 = arith.constant 0 : index
    %79 = vector.load %arg6[%c2_48, %c0_49, %c0_50] : memref<8x192x128xf32, #tpu.memory_space<vmem>>, vector<1x192x128xf32>
    %80 = vector.shape_cast %79 : vector<1x192x128xf32> to vector<192x128xf32>
    %cst_51 = arith.constant dense<0.000000e+00> : vector<1x128xf32>
    %81 = tpu.matmul %78, %80, %cst_51 {dimension_numbers = #tpu.dot_dimension_numbers<[1], [0], [0], [1], [0, 0, 1, 1], [], []>} : vector<1x192xf32>, vector<192x128xf32>, vector<1x128xf32> -> vector<1x128xf32>
    %82 = arith.addf %77, %81 : vector<1x128xf32>
    %83 = vector.extract_strided_slice %66 {offsets = [6, 0], sizes = [1, 192], strides = [1, 1]} : vector<16x192xf32> to vector<1x192xf32>
    %c3_52 = arith.constant 3 : index
    %c0_53 = arith.constant 0 : index
    %c0_54 = arith.constant 0 : index
    %84 = vector.load %arg6[%c3_52, %c0_53, %c0_54] : memref<8x192x128xf32, #tpu.memory_space<vmem>>, vector<1x192x128xf32>
    %85 = vector.shape_cast %84 : vector<1x192x128xf32> to vector<192x128xf32>
    %cst_55 = arith.constant dense<0.000000e+00> : vector<1x128xf32>
    %86 = tpu.matmul %83, %85, %cst_55 {dimension_numbers = #tpu.dot_dimension_numbers<[1], [0], [0], [1], [0, 0, 1, 1], [], []>} : vector<1x192xf32>, vector<192x128xf32>, vector<1x128xf32> -> vector<1x128xf32>
    %87 = arith.addf %82, %86 : vector<1x128xf32>
    %88 = vector.extract_strided_slice %66 {offsets = [8, 0], sizes = [1, 192], strides = [1, 1]} : vector<16x192xf32> to vector<1x192xf32>
    %c4_56 = arith.constant 4 : index
    %c0_57 = arith.constant 0 : index
    %c0_58 = arith.constant 0 : index
    %89 = vector.load %arg6[%c4_56, %c0_57, %c0_58] : memref<8x192x128xf32, #tpu.memory_space<vmem>>, vector<1x192x128xf32>
    %90 = vector.shape_cast %89 : vector<1x192x128xf32> to vector<192x128xf32>
    %cst_59 = arith.constant dense<0.000000e+00> : vector<1x128xf32>
    %91 = tpu.matmul %88, %90, %cst_59 {dimension_numbers = #tpu.dot_dimension_numbers<[1], [0], [0], [1], [0, 0, 1, 1], [], []>} : vector<1x192xf32>, vector<192x128xf32>, vector<1x128xf32> -> vector<1x128xf32>
    %92 = arith.addf %87, %91 : vector<1x128xf32>
    %93 = vector.extract_strided_slice %66 {offsets = [10, 0], sizes = [1, 192], strides = [1, 1]} : vector<16x192xf32> to vector<1x192xf32>
    %c5 = arith.constant 5 : index
    %c0_60 = arith.constant 0 : index
    %c0_61 = arith.constant 0 : index
    %94 = vector.load %arg6[%c5, %c0_60, %c0_61] : memref<8x192x128xf32, #tpu.memory_space<vmem>>, vector<1x192x128xf32>
    %95 = vector.shape_cast %94 : vector<1x192x128xf32> to vector<192x128xf32>
    %cst_62 = arith.constant dense<0.000000e+00> : vector<1x128xf32>
    %96 = tpu.matmul %93, %95, %cst_62 {dimension_numbers = #tpu.dot_dimension_numbers<[1], [0], [0], [1], [0, 0, 1, 1], [], []>} : vector<1x192xf32>, vector<192x128xf32>, vector<1x128xf32> -> vector<1x128xf32>
    %97 = arith.addf %92, %96 : vector<1x128xf32>
    %98 = vector.extract_strided_slice %66 {offsets = [12, 0], sizes = [1, 192], strides = [1, 1]} : vector<16x192xf32> to vector<1x192xf32>
    %c6 = arith.constant 6 : index
    %c0_63 = arith.constant 0 : index
    %c0_64 = arith.constant 0 : index
    %99 = vector.load %arg6[%c6, %c0_63, %c0_64] : memref<8x192x128xf32, #tpu.memory_space<vmem>>, vector<1x192x128xf32>
    %100 = vector.shape_cast %99 : vector<1x192x128xf32> to vector<192x128xf32>
    %cst_65 = arith.constant dense<0.000000e+00> : vector<1x128xf32>
    %101 = tpu.matmul %98, %100, %cst_65 {dimension_numbers = #tpu.dot_dimension_numbers<[1], [0], [0], [1], [0, 0, 1, 1], [], []>} : vector<1x192xf32>, vector<192x128xf32>, vector<1x128xf32> -> vector<1x128xf32>
    %102 = arith.addf %97, %101 : vector<1x128xf32>
    %103 = vector.extract_strided_slice %66 {offsets = [14, 0], sizes = [1, 192], strides = [1, 1]} : vector<16x192xf32> to vector<1x192xf32>
    %c7 = arith.constant 7 : index
    %c0_66 = arith.constant 0 : index
    %c0_67 = arith.constant 0 : index
    %104 = vector.load %arg6[%c7, %c0_66, %c0_67] : memref<8x192x128xf32, #tpu.memory_space<vmem>>, vector<1x192x128xf32>
    %105 = vector.shape_cast %104 : vector<1x192x128xf32> to vector<192x128xf32>
    %cst_68 = arith.constant dense<0.000000e+00> : vector<1x128xf32>
    %106 = tpu.matmul %103, %105, %cst_68 {dimension_numbers = #tpu.dot_dimension_numbers<[1], [0], [0], [1], [0, 0, 1, 1], [], []>} : vector<1x192xf32>, vector<192x128xf32>, vector<1x128xf32> -> vector<1x128xf32>
    %107 = arith.addf %102, %106 : vector<1x128xf32>
    %cst_69 = arith.constant 0.000000e+00 : f32
    %108 = vector.broadcast %cst_69 : f32 to vector<1x128xf32>
    %109 = arith.maximumf %107, %108 : vector<1x128xf32>
    %c0_70 = arith.constant 0 : index
    %c0_71 = arith.constant 0 : index
    %110 = vector.load %arg8[%c0_70, %c0_71] : memref<128x32xf32, #tpu.memory_space<vmem>>, vector<128x32xf32>
    %cst_72 = arith.constant dense<0.000000e+00> : vector<1x32xf32>
    %111 = tpu.matmul %109, %110, %cst_72 {dimension_numbers = #tpu.dot_dimension_numbers<[1], [0], [0], [1], [0, 0, 1, 1], [], []>} : vector<1x128xf32>, vector<128x32xf32>, vector<1x32xf32> -> vector<1x32xf32>
    %c0_73 = arith.constant 0 : index
    %c0_74 = arith.constant 0 : index
    %112 = vector.load %arg9[%c0_73, %c0_74] : memref<1x32xf32, #tpu.memory_space<vmem>>, vector<1x32xf32>
    %113 = arith.addf %111, %112 : vector<1x32xf32>
    %114 = arith.mulf %113, %113 : vector<1x32xf32>
    %cst_75 = arith.constant dense<0.000000e+00> : vector<1xf32>
    %115 = vector.multi_reduction <add>, %114, %cst_75 [1] : vector<1x32xf32> to vector<1xf32>
    %116 = vector.shape_cast %115 : vector<1xf32> to vector<1x1xf32>
    %117 = math.sqrt %116 : vector<1x1xf32>
    %cst_76 = arith.constant 9.99999996E-13 : f32
    %118 = vector.broadcast %cst_76 : f32 to vector<1x1xf32>
    %119 = arith.maximumf %117, %118 : vector<1x1xf32>
    %120 = vector.broadcast %119 : vector<1x1xf32> to vector<1x32xf32>
    %121 = arith.divf %113, %120 : vector<1x32xf32>
    %c0_77 = arith.constant 0 : index
    %c0_78 = arith.constant 0 : index
    %c0_79 = arith.constant 0 : index
    %122 = vector.load %arg10[%c0_77, %c0_78, %c0_79] : memref<1x1x32xf32, #tpu.memory_space<vmem>>, vector<1x1x32xf32>
    %123 = vector.shape_cast %122 : vector<1x1x32xf32> to vector<1x32xf32>
    %124 = vector.shape_cast %121 : vector<1x32xf32> to vector<1x1x32xf32>
    tpu.vector_store %arg10[%c0_77, %c0_78, %c0_79], %124 {strides = array<i32>} : memref<1x1x32xf32, #tpu.memory_space<vmem>>, vector<1x1x32xf32>,
    return
  }
  func.func @transform_0(%arg0: i32) -> (i32, i32, i32) {
    %c0_i32 = arith.constant 0 : i32
    %c0_i32_0 = arith.constant 0 : i32
    %c0_i32_1 = arith.constant 0 : i32
    return %arg0, %c0_i32, %c0_i32_0 : i32, i32, i32
  }
  func.func @transform_1(%arg0: i32) -> (i32, i32, i32) {
    %c0_i32 = arith.constant 0 : i32
    %c0_i32_0 = arith.constant 0 : i32
    %c0_i32_1 = arith.constant 0 : i32
    %c0_i32_2 = arith.constant 0 : i32
    return %c0_i32, %c0_i32_0, %c0_i32_1 : i32, i32, i32
  }
  func.func @transform_2(%arg0: i32) -> (i32, i32) {
    %c0_i32 = arith.constant 0 : i32
    %c0_i32_0 = arith.constant 0 : i32
    %c0_i32_1 = arith.constant 0 : i32
    return %c0_i32, %c0_i32_0 : i32, i32
  }
  func.func @transform_3(%arg0: i32) -> (i32, i32, i32) {
    %c0_i32 = arith.constant 0 : i32
    %c0_i32_0 = arith.constant 0 : i32
    %c0_i32_1 = arith.constant 0 : i32
    %c0_i32_2 = arith.constant 0 : i32
    return %c0_i32, %c0_i32_0, %c0_i32_1 : i32, i32, i32
  }
  func.func @transform_4(%arg0: i32) -> (i32, i32) {
    %c0_i32 = arith.constant 0 : i32
    %c0_i32_0 = arith.constant 0 : i32
    %c0_i32_1 = arith.constant 0 : i32
    return %c0_i32, %c0_i32_0 : i32, i32
  }
  func.func @transform_5(%arg0: i32) -> (i32, i32, i32) {
    %c0_i32 = arith.constant 0 : i32
    %c0_i32_0 = arith.constant 0 : i32
    %c0_i32_1 = arith.constant 0 : i32
    %c0_i32_2 = arith.constant 0 : i32
    return %c0_i32, %c0_i32_0, %c0_i32_1 : i32, i32, i32
  }
  func.func @transform_6(%arg0: i32) -> (i32, i32) {
    %c0_i32 = arith.constant 0 : i32
    %c0_i32_0 = arith.constant 0 : i32
    %c0_i32_1 = arith.constant 0 : i32
    return %c0_i32, %c0_i32_0 : i32, i32
  }
  func.func @transform_7(%arg0: i32) -> (i32, i32) {
    %c0_i32 = arith.constant 0 : i32
    %c0_i32_0 = arith.constant 0 : i32
    %c0_i32_1 = arith.constant 0 : i32
    return %c0_i32, %c0_i32_0 : i32, i32
  }
  func.func @transform_8(%arg0: i32) -> (i32, i32) {
    %c0_i32 = arith.constant 0 : i32
    %c0_i32_0 = arith.constant 0 : i32
    %c0_i32_1 = arith.constant 0 : i32
    return %c0_i32, %c0_i32_0 : i32, i32
  }
  func.func @transform_9(%arg0: i32) -> (i32, i32, i32) {
    %c0_i32 = arith.constant 0 : i32
    %c0_i32_0 = arith.constant 0 : i32
    %c0_i32_1 = arith.constant 0 : i32
    return %arg0, %c0_i32, %c0_i32_0 : i32, i32, i32
  }
}

</mosaic_0001>

<bundles_post_ra>
// kernel: tpu_custom_call.1
= control target key start
LH: loop header
LB: loop body
LE: loop exit
PB: predicated region body
PF: predicated region fallthrough
CT: control target
= control target key end

     0   :  { %14 = vsyncpa [#allocation3], 0  ;;  %s3929_s0 = inlined_call_operand.vmem [shape: f32[2,25,120], index: 0, kind: input, shape index: {}]   ;;  %s3930_s1 = inlined_call_operand.hbm [shape: f32[5,120,256], index: 1, kind: input, shape index: {}]   ;;  %s3931_s2 = inlined_call_operand.vmem [shape: f32[1,96], index: 2, kind: input, shape index: {}]   ;;  %s3932_s3 = inlined_call_operand.hbm [shape: f32[3,96,192], index: 3, kind: input, shape index: {}]   ;;  %s3933_s4 = inlined_call_operand.vmem [shape: f32[1,192], index: 4, kind: input, shape index: {}]   ;;  %s3934_s5 = inlined_call_operand.hbm [shape: f32[8,192,128], index: 5, kind: input, shape index: {}]   ;;  %s3935_s6 = inlined_call_operand.vmem [shape: f32[1,128], index: 6, kind: input, shape index: {}]   ;;  %s3936_s7 = inlined_call_operand.vmem [shape: f32[128,32], index: 7, kind: input, shape index: {}]   ;;  %s3937_s8 = inlined_call_operand.vmem [shape: f32[1,32], index: 8, kind: input, shape index: {}]   ;;  %s3938_s9 = inlined_call_operand.hbm [shape: f32[2,1,32], index: 9, kind: output, shape index: {}]  }
   0x1   :  { %15 = vsyncpa [#allocation6], 0 }
   0x2   :  { %16 = vsyncpa [#allocation4], 0 }
   0x3   :  { %18 = vsyncpa [#allocation4 + $0x1], 0  ;;  %s3404_s30 = smov 0   ;;  %s3406_s10 = smov 0  }
   0x4   :  { %s3408_s11 = smov 0   ;;  %s3410_s12 = smov 0  }
   0x5 LB: > { %3947 = sst [smem:[#allocation12_spill]] %s3329_s30  ;;  %s3425_s13 = sadd.s32 4294967295, %s3341_s12   ;;  %s3341_s12 = sphi %s3410_s12, %s3966_s12   ;;  %s3337_s11 = sphi %s3408_s11, %s3968_s11   ;;  %s3333_s10 = sphi %s3406_s10, %s3970_s10   ;;  %s3329_s30 = sphi %s3404_s30, %s3969_s30  }
   0x6   : > { %3948 = sst [smem:[#allocation13_spill]] %s3337_s11  ;;  %s2438_s14 = sadd.s32 4294967294, %s3341_s12  }
   0x7   : > { %s3429_s15 = sadd.s32 1, %s3341_s12   ;;  %s225_s16 = sadd.s32 1, %s3337_s11 }
   0x8   : > { %3949 = sst [smem:[#allocation14_spill]] %s3429_s15  ;;  %s222_s17 = ssub.s32 %s3341_s12, %s3429_s15 }
   0x9   : > { %p235_p0 = scmp.ne.s32.totalorder %s3337_s11, %s3333_s10  ;;  %p223_p1 = scmp.eq.s32.totalorder %s222_s17, 0 }
   0xa   : > { %p236_p2 = scmp.eq.s32.totalorder %s3425_s13, 1  ;;  %p241_p3 = scmp.ne.s32.totalorder %s3333_s10, %s3329_s30 }
   0xb   : > { %p242_p4 = scmp.eq.s32.totalorder %s2438_s14, 1  ;;  %p2439_p7 = scmp.ge.s32.totalorder %s3341_s12, 1 }
   0xc   : > { %s3440_s18 = scalar_select %p223_p1, %s3337_s11, %s225_s16  }
   0xd   : > { %p3442_p5 = por %p236_p2, %p235_p0  ;;  %p3446_p6 = por %p242_p4, %p241_p3 }
   0xe   : > { %3950 = sst [smem:[#allocation15_spill]] %s3440_s18  ;;  %p249_p8 = scmp.lt.s32.totalorder %s3341_s12, 3 }
   0xf   : > { %s3951_s19 = scalar_select %p3442_p5, 1, 0 }
  0x10   : > { %s3952_s20 = scalar_select %p3446_p6, 1, 0 }
  0x11   : > { %p3939_p9 = scmp.eq.s32.totalorder %s3425_s13, 0  ;;  %p3453_p10 = pnand %p2439_p7, %p249_p8 }
  0x12   : > { %3953 = sst [smem:[#allocation16_spill]] %s3952_s20  ;;  %s3343_s22 = smov [#allocation5]  }
  0x13   : > { %s3954_s21 = scalar_select %p3453_p10, 1, 0 }
  0x14   : > { %p3120_p11 = pneg %p3453_p10  ;;  %s277_s23 = sshll.u32 %s3343_s22, 4  ;;  %s3459_s23 = int_to_ptr.vmem [resolvable:$true] %s277_s23 }
  0x15   : > { %s3344_s25 = smov [#allocation2]   ;;  %s3345_s27 = smov [#allocation7]  }
  0x16   : > { %p3463_p12 = pnand %p3939_p9, %p3120_p11  ;;  %s261_s26 = sshll.u32 %s3344_s25, 4  ;;  %s3467_s26 = int_to_ptr.vmem [resolvable:$true] %s261_s26 }
  0x17   : > { %s3469_s28 = sshll.u32 %s3345_s27, 4  ;;  %s3187_s16 = scalar_lea.hbm %s3932_s3, 9216  ;;  %s294_s28 = int_to_ptr.vmem [resolvable:$true] %s3469_s28 }
  0x18   : > { %p3188_p13 = scmp.ne.s32.totalorder %s3932_s3, %s3187_s16  ;;  %p3479_p0 = pneg %p3463_p12 }
  0x19   : > { %p3194_p3 = scmp.lt.u32.totalorder %s3187_s16, %s3932_s3 }
  0x1a   : > { %p3190_p1 = pnand %p3479_p0, %p3188_p13 }
  0x1c   : > { %p3191_p2 = pneg %p3190_p1 }
  0x1e   : > { %p3196_p4 = pnand %p3194_p3, %p3191_p2 }
  0x20   : > { %3199 = shalt.err (!%p3196_p4)
}
  0x21   : > { %s3200_s29 = scalar_lea.vmem %s3459_s23, 9216  ;;  %p3208_p9 = scmp.lt.s32.totalorder %s3459_s23, %s3459_s23 }
  0x22   : > { %p3201_p7 = scmp.ne.s32.totalorder %s3459_s23, %s3200_s29  ;;  %p3209_p6 = scmp.lt.s32.totalorder %s3200_s29, %s3200_s29 }
  0x24   : > { %p3203_p8 = pnand %p3201_p7, %p3479_p0  ;;  %p3210_p13 = por %p3209_p6, %p3208_p9 }
  0x26   : > { %p3204_p11 = pneg %p3203_p8 }
  0x28   : > { %p3211_p1 = pnand %p3210_p13, %p3204_p11 }
  0x2a   : > { %3214 = shalt.err (!%p3211_p1)
}
  0x2b   : > { %s3346_s14 = smov 256   ;;  %s3347_s16 = smov 16  }
  0x2c   : > { %3126 = dma.hbm_to_vmem [thread:$0]  (!%p3463_p12), %s3932_s3, 9216, %s3459_s23, [#allocation6], %s3346_s14, %s3346_s14, %s3347_s16  }
  0x2d   : > { %s3215_s11 = scalar_lea.hbm %s3930_s1, 19200 }
  0x2e   : > { %p3216_p6 = scmp.ne.s32.totalorder %s3930_s1, %s3215_s11  ;;  %p3222_p3 = scmp.lt.u32.totalorder %s3215_s11, %s3930_s1 }
  0x30   : > { %p3218_p9 = pnand %p3216_p6, %p3479_p0 }
  0x32   : > { %p3219_p2 = pneg %p3218_p9 }
  0x34   : > { %p3224_p4 = pnand %p3222_p3, %p3219_p2 }
  0x36   : > { %3227 = shalt.err (!%p3224_p4)
}
  0x37   : > { %s3228_s23 = scalar_lea.vmem %s3467_s26, 19200  ;;  %p3236_p13 = scmp.lt.s32.totalorder %s3467_s26, %s3467_s26 }
  0x38   : > { %p3229_p7 = scmp.ne.s32.totalorder %s3467_s26, %s3228_s23  ;;  %p3237_p1 = scmp.lt.s32.totalorder %s3228_s23, %s3228_s23 }
  0x3a   : > { %p3231_p8 = pnand %p3229_p7, %p3479_p0  ;;  %p3238_p6 = por %p3237_p1, %p3236_p13 }
  0x3c   : > { %p3232_p11 = pneg %p3231_p8 }
  0x3e   : > { %p3239_p9 = pnand %p3238_p6, %p3232_p11 }
  0x40   : > { %3242 = shalt.err (!%p3239_p9)
}
  0x41   : > { %3123 = dma.hbm_to_vmem [thread:$0]  (!%p3463_p12), %s3930_s1, 19200, %s3467_s26, [#allocation3], %s3346_s14, %s3346_s14, %s3347_s16  }
  0x42   : > { %s3243_s17 = scalar_lea.hbm %s3934_s5, 24576 }
  0x43   : > { %p3244_p2 = scmp.ne.s32.totalorder %s3934_s5, %s3243_s17  ;;  %p3250_p7 = scmp.lt.u32.totalorder %s3243_s17, %s3934_s5 }
  0x45   : > { %p3246_p3 = pnand %p3244_p2, %p3479_p0 }
  0x47   : > { %p3247_p4 = pneg %p3246_p3 }
  0x49   : > { %p3252_p8 = pnand %p3250_p7, %p3247_p4 }
  0x4b   : > { %3255 = shalt.err (!%p3252_p8)
}
  0x4c   : > { %s3256_s23 = scalar_lea.vmem %s294_s28, 24576  ;;  %p3264_p6 = scmp.lt.s32.totalorder %s294_s28, %s294_s28 }
  0x4d   : > { %p3257_p11 = scmp.ne.s32.totalorder %s294_s28, %s3256_s23  ;;  %p3265_p9 = scmp.lt.s32.totalorder %s3256_s23, %s3256_s23 }
  0x4f   : > { %p3259_p13 = pnand %p3257_p11, %p3479_p0  ;;  %p3266_p5 = por %p3265_p9, %p3264_p6 }
  0x51   : > { %p3260_p1 = pneg %p3259_p13 }
  0x53   : > { %p3267_p10 = pnand %p3266_p5, %p3260_p1 }
  0x55   : > { %3270 = shalt.err (!%p3267_p10)
}
  0x56   : > { %s3348_s26 = smov 128   ;;  %s3349_s14 = smov 8  }
  0x57   : > { %3129 = dma.hbm_to_vmem [thread:$0]  (!%p3463_p12), %s3934_s5, 24576, %s294_s28, [#allocation6], %s3348_s26, %s3348_s26, %s3349_s14  }
  0x58   : > { %p3957_p2 = scmp.ne.s32.totalorder %s3954_s21, 0 }
  0x59   : > { %p3958_p3 = scmp.eq.s32.totalorder (!%p3957_p2), %s3425_s13, 0 }
  0x5a   : > { %326 = sbr.rel (%p3957_p2) target bundleno = 1564 (0x61c), region = 56 }
  0x61   : > { %3316 = dma.done.wait (%p3958_p3), [#allocation3], 19200   ;;  %p3959_p0 = pmov %p3958_p3 }
  0x63   : > { %3318 = vsyncadd (%p3959_p0), [#allocation3], 4294948096  ;;  %p3960_p5 = pmov %p3959_p0 }
  0x64   : > { %p3961_p10 = pmov %p3959_p0 }
  0x65   : > { %3320 = dma.done.wait (%p3960_p5), [#allocation6], 33792  }
  0x66   : > { %3322 = vsyncadd (%p3961_p10), [#allocation6], 4294933504  ;;  %v3350_v0 = vmov 0.0   ;;  %p369_p12 = scmp.lt.s32.totalorder %s3425_s13, 1  ;;  %v410_v1 = vld [vmem:[#allocation2 + $0xf8] sm:$0xff]  ;;  %v412_v2 = vld [vmem:[#allocation2 + $0x108] sm:$0xff] }
  0x67   : > { %519 = vmatprep.mubr.f32.mxu0 %v3350_v0  ;;  %1183 = vmatprep.mubr.f32.mxu1 %v3350_v0  ;;  %v409_v3 = vld [vmem:[#allocation2 + $0xf0] sm:$0xff]  ;;  %v2536_v4 = vpack.c.bf16 %v412_v2, %v410_v1  ;;  %v411_v5 = vld [vmem:[#allocation2 + $0x100] sm:$0xff]  ;;  %v414_v6 = vld [vmem:[#allocation2 + $0x118] sm:$0xff]  ;;  %vm790_vm0 = vcmask 1044480   ;;  %vm923_vm1 = vcmask 1043456   ;;  %vm442_vm2 = vcmask 1046528  }
  0x68   : > { %s370_s18 = scalar_select %p369_p12, %s3425_s13, 1  ;;  %v416_v7 = vld [vmem:[#allocation2 + $0x128] sm:$0xff]  ;;  %v2538_v8 = vpack.c.bf16 %v411_v5, %v409_v3  ;;  %v413_v10 = vld [vmem:[#allocation2 + $0x110] sm:$0xff]  ;;  %v415_v11 = vld [vmem:[#allocation2 + $0x120] sm:$0xff]  ;;  %vm448_vm3 = vcmask 982016   ;;  %vm658_vm4 = vcmask 1045504  }
  0x69   : > { %v2540_v9 = vpack.c.bf16 %v416_v7, %v414_v6  ;;  %v418_v12 = vld [vmem:[#allocation2 + $0x138] sm:$0xff]  ;;  %2537 = vmatprep.subr.bf16.mxu0 %v2536_v4  ;;  %v420_v13 = vld [vmem:[#allocation2 + $0x148] sm:$0xff]  ;;  %v2542_v14 = vpack.c.bf16 %v415_v11, %v413_v10  ;;  %v417_v16 = vld [vmem:[#allocation2 + $0x130] sm:$0xff]  ;;  %vm1112_vm6 = vcmask 785408   ;;  %vm1453_vm8 = vcmask 523264   ;;  %s367_s29 = sand.u32 1, %s3333_s10  }
  0x6a   : > { %2539 = vmatpush1.bf16.msra.mxu0 %v2538_v8  ;;  %s2483_s21 = sshll.u32 %s370_s18, 5  ;;  %v2544_v15 = vpack.c.bf16 %v420_v13, %v418_v12  ;;  %v419_v17 = vld [vmem:[#allocation2 + $0x140] sm:$0xff]  ;;  %v422_v18 = vld [vmem:[#allocation2 + $0x158] sm:$0xff]  ;;  %v424_v19 = vld [vmem:[#allocation2 + $0x168] sm:$0xff]  ;;  %vm3352_vm9 = vmmov 0   ;;  %vm2324_vm10 = vcmask 253952  }
  0x6b   : > { %2541 = vmatprep.subr.bf16.mxu0 %v2540_v9  ;;  %s3559_s11 = scalar_lea.vmem %s3929_s0, %s2483_s21  ;;  %v2546_v20 = vpack.c.bf16 %v419_v17, %v417_v16  ;;  %v2548_v21 = vpack.c.bf16 %v424_v19, %v422_v18  ;;  %v421_v22 = vld [vmem:[#allocation2 + $0x150] sm:$0xff]  ;;  %v423_v23 = vld [vmem:[#allocation2 + $0x160] sm:$0xff]  ;;  %v426_v24 = vld [vmem:[#allocation2 + $0x178] sm:$0xff]  ;;  %s2480_s23 = sshll.u32 %s3425_s13, 4 }
  0x6c   : > { %v428_v25 = vld [vmem:[#allocation2 + $0x188] sm:$0xff]  ;;  %v3562_v26 = vld [vmem:[%s3559_s11] sm:$0xff]  ;;  %v2550_v29 = vpack.c.bf16 %v423_v23, %v421_v22  ;;  %v425_v32 = vld [vmem:[#allocation2 + $0x170] sm:$0xff]  ;;  %s368_s26 = scalar_lea.vmem [#allocation8], %s367_s29  ;;  %s3886_s18 = scalar_lea.hbm %s3938_s9, %s2480_s23 }
  0x6d   : > { %v3565_v27 = vld [vmem:[%s3559_s11 + $0x8] sm:$0xff]  ;;  %v791_v28 = vrot.slane %v3562_v26, 3  ;;  %v2552_v31 = vpack.c.bf16 %v428_v25, %v426_v24  ;;  %v427_v33 = vld [vmem:[#allocation2 + $0x180] sm:$0xff]  ;;  %v430_v34 = vld [vmem:[#allocation2 + $0x198] sm:$0xff]  ;;  %v924_v50 = vrot.slane %v3562_v26, 4  ;;  %v443_v57 = vrot.slane %v3562_v26, 1 }
  0x6e   : > { %2543 = vmatpush1.bf16.msra.mxu0 %v2542_v14  ;;  %v792_v30 = vrot.slane %v3565_v27, 3  ;;  %v432_v35 = vld [vmem:[#allocation2 + $0x1a8] sm:$0xff]  ;;  %v2554_v37 = vpack.c.bf16 %v427_v33, %v425_v32  ;;  %v429_v39 = vld [vmem:[#allocation2 + $0x190] sm:$0xff]  ;;  %v431_v40 = vld [vmem:[#allocation2 + $0x1a0] sm:$0xff]  ;;  %v925_v51 = vrot.slane %v3565_v27, 4  ;;  %v444_v58 = vrot.slane %v3565_v27, 1 }
  0x6f   : > { %2545 = vmatprep.subr.bf16.mxu0 %v2544_v15  ;;  %v2556_v38 = vpack.c.bf16 %v432_v35, %v430_v34  ;;  %v434_v41 = vld [vmem:[#allocation2 + $0x1b8] sm:$0xff]  ;;  %v436_v42 = vld [vmem:[#allocation2 + $0x1c8] sm:$0xff]  ;;  %v3573_v43 = vld [vmem:[%s3559_s11 + $0x10] sm:$0xff]  ;;  %v2558_v45 = vpack.c.bf16 %v431_v40, %v429_v39  ;;  %s2352_s14 = sshll.u32 %s368_s26, 4  ;;  %s2340_s21 = scalar_lea.sflag [#allocation4], %s367_s29  ;;  %s3888_s14 = int_to_ptr.vmem [resolvable:$true] %s2352_s14 }
  0x70   : > { %v3570_v36 = vsel %vm790_vm0, %v791_v28, %v792_v30  ;;  %v794_v44 = vrot.slane %v3573_v43, 3  ;;  %v2560_v46 = vpack.c.bf16 %v436_v42, %v434_v41  ;;  %v433_v47 = vld [vmem:[#allocation2 + $0x1b0] sm:$0xff]  ;;  %v435_v48 = vld [vmem:[#allocation2 + $0x1c0] sm:$0xff]  ;;  %v3584_v53 = vsel %vm923_vm1, %v924_v50, %v925_v51  ;;  %v438_v54 = vld [vmem:[#allocation2 + $0x1d8] sm:$0xff]  ;;  %s3271_s24 = scalar_lea.vmem %s3888_s14, 16  ;;  %p3962_p7 = scmp.ne.s32.totalorder %s3951_s19, 0 }
  0x71   : > { %v2562_v52 = vpack.c.bf16 %v435_v48, %v433_v47  ;;  %v379_v55 = vld [vmem:[#allocation2 + $0x8] sm:$0xff]  ;;  %v381_v56 = vld [vmem:[#allocation2 + $0x18] sm:$0xff]  ;;  %v927_v59 = vrot.slane %v3573_v43, 4  ;;  %v378_v60 = vld [vmem:[#allocation2] sm:$0xff]  ;;  %v445_v4 = vsel %vm442_vm2, %v443_v57, %v444_v58  ;;  %v446_v6 = vrot.slane %v3573_v43, 1  ;;  %p3272_p4 = scmp.ne.s32.totalorder %s3888_s14, %s3271_s24  ;;  %s3353_s13 = smov [#allocation8]  }
  0x72   : > { %2547 = vmatpush1.bf16.msra.mxu0 %v2546_v20  ;;  %v3579_v49 = vsel %vm790_vm0, %v792_v30, %v794_v44  ;;  %v380_v61 = vld [vmem:[#allocation2 + $0x10] sm:$0xff]  ;;  %v383_v62 = vld [vmem:[#allocation2 + $0x28] sm:$0xff]  ;;  %v385_v63 = vld [vmem:[#allocation2 + $0x38] sm:$0xff]  ;;  %v2564_v3 = vpack.c.bf16 %v381_v56, %v379_v55  ;;  %s3275_s28 = sshll.u32 %s3353_s13, 4  ;;  %s3276_s28 = int_to_ptr.vmem [resolvable:$false] %s3275_s28 }
  0x73   : > { %2549 = vmatprep.subr.bf16.mxu0 %v2548_v21  ;;  %v3592_v1 = vsel %vm923_vm1, %v925_v51, %v927_v59  ;;  %v437_v2 = vld [vmem:[#allocation2 + $0x1d0] sm:$0xff]  ;;  %v2566_v5 = vpack.c.bf16 %v380_v61, %v378_v60  ;;  %v2568_v7 = vpack.c.bf16 %v385_v63, %v383_v62  ;;  %v382_v8 = vld [vmem:[#allocation2 + $0x20] sm:$0xff]  ;;  %v387_v10 = vld [vmem:[#allocation2 + $0x48] sm:$0xff]  ;;  %v447_v13 = vsel %vm442_vm2, %v444_v58, %v446_v6  ;;  %p3273_p8 = pnand %p3272_p4, %p3962_p7  ;;  %p3278_p13 = scmp.lt.s32.totalorder %s3888_s14, %s3276_s28 }
  0x74   : > { %v384_v9 = vld [vmem:[#allocation2 + $0x30] sm:$0xff]  ;;  %v389_v11 = vld [vmem:[#allocation2 + $0x58] sm:$0xff]  ;;  %v386_v15 = vld [vmem:[#allocation2 + $0x40] sm:$0xff] }
  0x75   : > { %v2570_v12 = vpack.c.bf16 %v384_v9, %v382_v8  ;;  %v2572_v14 = vpack.c.bf16 %v389_v11, %v387_v10  ;;  %v388_v16 = vld [vmem:[#allocation2 + $0x50] sm:$0xff]  ;;  %v391_v17 = vld [vmem:[#allocation2 + $0x68] sm:$0xff]  ;;  %v393_v18 = vld [vmem:[#allocation2 + $0x78] sm:$0xff]  ;;  %p3274_p11 = pneg %p3273_p8 }
  0x76   : > { %2551 = vmatpush1.bf16.msra.mxu0 %v2550_v29  ;;  %v2574_v19 = vpack.c.bf16 %v388_v16, %v386_v15  ;;  %v2576_v20 = vpack.c.bf16 %v393_v18, %v391_v17  ;;  %v390_v21 = vld [vmem:[#allocation2 + $0x60] sm:$0xff]  ;;  %v392_v22 = vld [vmem:[#allocation2 + $0x70] sm:$0xff]  ;;  %v395_v23 = vld [vmem:[#allocation2 + $0x88] sm:$0xff] }
  0x77   : > { %2553 = vmatprep.subr.bf16.mxu0 %v2552_v31  ;;  %v397_v24 = vld [vmem:[#allocation2 + $0x98] sm:$0xff]  ;;  %v2578_v25 = vpack.c.bf16 %v392_v22, %v390_v21  ;;  %v394_v29 = vld [vmem:[#allocation2 + $0x80] sm:$0xff]  ;;  %v396_v30 = vld [vmem:[#allocation2 + $0x90] sm:$0xff] }
  0x78   : > { %v2580_v28 = vpack.c.bf16 %v397_v24, %v395_v23  ;;  %v399_v31 = vld [vmem:[#allocation2 + $0xa8] sm:$0xff]  ;;  %v401_v32 = vld [vmem:[#allocation2 + $0xb8] sm:$0xff]  ;;  %v2582_v33 = vpack.c.bf16 %v396_v30, %v394_v29  ;;  %v398_v35 = vld [vmem:[#allocation2 + $0xa0] sm:$0xff] }
  0x79   : > { %v2584_v34 = vpack.c.bf16 %v401_v32, %v399_v31  ;;  %v405_v39 = vld [vmem:[#allocation2 + $0xd8] sm:$0xff]  ;;  %v402_v41 = vld [vmem:[#allocation2 + $0xc0] sm:$0xff]  ;;  %v404_v42 = vld [vmem:[#allocation2 + $0xd0] sm:$0xff] }
  0x7a   : > { %2555 = vmatpush1.bf16.msra.mxu0 %v2554_v37  ;;  %v400_v37 = vld [vmem:[#allocation2 + $0xb0] sm:$0xff]  ;;  %v1089_v47 = vld [vmem:[#allocation5 + $0x8] sm:$0xff]  ;;  %v1091_v48 = vld [vmem:[#allocation5 + $0x18] sm:$0xff]  ;;  %v2590_v61 = vpack.c.bf16 %v404_v42, %v402_v41 }
  0x7b   : > { %2557 = vmatprep.subr.bf16.mxu0 %v2556_v38  ;;  %v403_v38 = vld [vmem:[#allocation2 + $0xc8] sm:$0xff]  ;;  %v2586_v40 = vpack.c.bf16 %v400_v37, %v398_v35  ;;  %v2676_v51 = vpack.c.bf16 %v1091_v48, %v1089_v47  ;;  %v1093_v55 = vld [vmem:[#allocation5 + $0x28] sm:$0xff]  ;;  %v1092_v58 = vld [vmem:[#allocation5 + $0x20] sm:$0xff] }
  0x7c   : > { %v1095_v57 = vld [vmem:[#allocation5 + $0x38] sm:$0xff]  ;;  %v1094_v60 = vld [vmem:[#allocation5 + $0x30] sm:$0xff]  ;;  %v635_v9 = vld [vmem:[#allocation2 + $0x218] sm:$0xff] }
  0x7d   : > { %2677 = vmatprep.subr.bf16.mxu1 %v2676_v51  ;;  %v2680_v63 = vpack.c.bf16 %v1095_v57, %v1093_v55  ;;  %v633_v8 = vld [vmem:[#allocation2 + $0x208] sm:$0xff]  ;;  %v406_v10 = vld [vmem:[#allocation2 + $0xe0] sm:$0xff]  ;;  %v639_v16 = vld [vmem:[#allocation2 + $0x238] sm:$0xff]  ;;  %v660_v57 = vrot.slane %v3565_v27, 2 }
  0x7e   : > { %2559 = vmatpush1.bf16.msra.mxu0 %v2558_v45  ;;  %v2588_v45 = vpack.c.bf16 %v405_v39, %v403_v38  ;;  %v637_v15 = vld [vmem:[#allocation2 + $0x228] sm:$0xff]  ;;  %v643_v22 = vld [vmem:[#allocation2 + $0x258] sm:$0xff]  ;;  %v650_v41 = vld [vmem:[#allocation2 + $0x290] sm:$0xff] }
  0x7f   : > { %2561 = vmatprep.subr.bf16.mxu0 %v2560_v46  ;;  %v377_v46 = vld [vmem:[%s3559_s11 + $0x18] sm:$0x1]  ;;  %v2600_v18 = vpack.c.bf16 %v639_v16, %v637_v15  ;;  %v641_v21 = vld [vmem:[#allocation2 + $0x248] sm:$0xff]  ;;  %v652_v48 = vld [vmem:[#allocation2 + $0x2a0] sm:$0xff]  ;;  %s3277_s11 = scalar_lea.vmem %s3276_s28, 32 }
  0x80   : > { %v929_v50 = vrot.slane %v377_v46, 4  ;;  %v2604_v24 = vpack.c.bf16 %v643_v22, %v641_v21  ;;  %v645_v29 = vld [vmem:[#allocation2 + $0x268] sm:$0xff]  ;;  %v647_v30 = vld [vmem:[#allocation2 + $0x278] sm:$0xff]  ;;  %p3279_p1 = scmp.lt.s32.totalorder %s3277_s11, %s3271_s24 }
  0x81   : > { %v2608_v32 = vpack.c.bf16 %v647_v30, %v645_v29  ;;  %v649_v35 = vld [vmem:[#allocation2 + $0x288] sm:$0xff]  ;;  %v651_v37 = vld [vmem:[#allocation2 + $0x298] sm:$0xff] }
  0x82   : > { %2563 = vmatpush1.bf16.msra.mxu0 %v2562_v52  ;;  %v1088_v52 = vld [vmem:[#allocation5] sm:$0xff]  ;;  %v3607_v62 = vsel %vm923_vm1, %v927_v59, %v929_v50  ;;  %v2612_v39 = vpack.c.bf16 %v651_v37, %v649_v35  ;;  %v653_v42 = vld [vmem:[#allocation2 + $0x2a8] sm:$0xff]  ;;  %p3280_p6 = por %p3279_p1, %p3278_p13 }
  0x83   : > { %483 = vmatprep.subr.mxu0 %v438_v54  ;;  %v1090_v54 = vld [vmem:[#allocation5 + $0x10] sm:$0xff]  ;;  %v654_v50 = vld [vmem:[#allocation2 + $0x2b0] sm:$0xff]  ;;  %v763_v55 = vld [vmem:[#allocation2 + $0x2e8] sm:$0xff] }
  0x84   : > { %v2678_v56 = vpack.c.bf16 %v1090_v54, %v1088_v52  ;;  %v2618_v51 = vpack.c.bf16 %v654_v50, %v652_v48  ;;  %v657_v52 = vld [vmem:[#allocation2 + $0x2c8] sm:$0xff]  ;;  %v761_v54 = vld [vmem:[#allocation2 + $0x2d8] sm:$0xff]  ;;  %v894_v48 = vld [vmem:[#allocation2 + $0x3d0] sm:$0xff]  ;;  %p3281_p9 = pnand %p3280_p6, %p3274_p11 }
  0x85   : > { %v775_v15 = vld [vmem:[#allocation2 + $0x348] sm:$0xff] }
  0x86   : > { %484 = vmatpush1.msra.mxu0 %v437_v2  ;;  %2679 = vmatpush1.bf16.msra.mxu1 %v2678_v56  ;;  %v2682_v2 = vpack.c.bf16 %v1094_v60, %v1092_v58  ;;  %v659_v56 = vrot.slane %v3562_v26, 2  ;;  %v760_v58 = vld [vmem:[#allocation2 + $0x2d0] sm:$0xff]  ;;  %v762_v60 = vld [vmem:[#allocation2 + $0x2e0] sm:$0xff]  ;;  %v779_v21 = vld [vmem:[#allocation2 + $0x368] sm:$0xff] }
  0x87   : > { %2565 = vmatprep.subr.bf16.mxu0 %v2564_v3  ;;  %2450 = vmatmul.mubr.msk.f32.vlgmr.msra.gmra.mrb[0].mxu0 %vm448_vm3, %v445_v4  ;;  %v407_v3 = vld [vmem:[#allocation2 + $0xe8] sm:$0xff] }
  0x88   : > { %2567 = vmatpush1.bf16.msra.mxu0 %v2566_v5  ;;  %525 = vmatprep.mubr.f32.mxu0 %v3350_v0  ;;  %v629_v4 = vld [vmem:[#allocation2 + $0x1e8] sm:$0xff]  ;;  %v631_v5 = vld [vmem:[#allocation2 + $0x1f8] sm:$0xff] }
  0x89   : > { %2569 = vmatprep.subr.bf16.mxu0 %v2568_v7  ;;  %2681 = vmatprep.subr.bf16.mxu1 %v2680_v63  ;;  %v630_v7 = vld [vmem:[#allocation2 + $0x1f0] sm:$0xff]  ;;  %v2592_v11 = vpack.c.bf16 %v631_v5, %v629_v4  ;;  %v767_v63 = vld [vmem:[#allocation2 + $0x308] sm:$0xff]  ;;  %v661_v4 = vsel %vm658_vm4, %v659_v56, %v660_v57  ;;  %v2622_v5 = vpack.c.bf16 %v762_v60, %v760_v58 }
  0x8a   : > { %2683 = vmatpush1.bf16.msra.mxu1 %v2682_v2  ;;  %v656_v2 = vld [vmem:[#allocation2 + $0x2c0] sm:$0xff]  ;;  %v783_v29 = vld [vmem:[#allocation2 + $0x388] sm:$0xff]  ;;  %v898_v58 = vld [vmem:[#allocation2 + $0x3f0] sm:$0xff] }
  0x8b   : > { %2451 = vmatmul.mubr.msk.f32.gmra.mrb[2].mxu0 %vm448_vm3, %v447_v13  ;;  %v632_v13 = vld [vmem:[#allocation2 + $0x200] sm:$0xff]  ;;  %v787_v35 = vld [vmem:[#allocation2 + $0x3a8] sm:$0xff] }
  0x8c   : > { %2571 = vmatpush1.bf16.msra.mxu0 %v2570_v12  ;;  %531 = vmatprep.mubr.f32.mxu0 %v3350_v0  ;;  %v2596_v12 = vpack.c.bf16 %v635_v9, %v633_v8  ;;  %v764_v8 = vld [vmem:[#allocation2 + $0x2f0] sm:$0xff]  ;;  %v766_v9 = vld [vmem:[#allocation2 + $0x300] sm:$0xff]  ;;  %v897_v50 = vld [vmem:[#allocation2 + $0x3e8] sm:$0xff] }
  0x8d   : > { %2573 = vmatprep.subr.bf16.mxu0 %v2572_v14  ;;  %v634_v14 = vld [vmem:[#allocation2 + $0x210] sm:$0xff]  ;;  %v901_v60 = vld [vmem:[#allocation2 + $0x408] sm:$0xff] }
  0x8e   : > { %v2598_v17 = vpack.c.bf16 %v634_v14, %v632_v13  ;;  %v770_v13 = vld [vmem:[#allocation2 + $0x320] sm:$0xff]  ;;  %v773_v14 = vld [vmem:[#allocation2 + $0x338] sm:$0xff] }
  0x8f   : > { %2452 = vmatmul.mubr.msk.f32.gmra.mrb[4].mxu0 %vm448_vm3, %v446_v6  ;;  %v628_v6 = vld [vmem:[#allocation2 + $0x1e0] sm:$0xff] }
  0x90   : > { %2575 = vmatpush1.bf16.msra.mxu0 %v2574_v19  ;;  %608 = vmatprep.mubr.f32.mxu0 %v3350_v0  ;;  %v2594_v59 = vpack.c.bf16 %v630_v7, %v628_v6  ;;  %v636_v19 = vld [vmem:[#allocation2 + $0x220] sm:$0xff]  ;;  %v662_v6 = vrot.slane %v3573_v43, 2 }
  0x91   : > { %2577 = vmatprep.subr.bf16.mxu0 %v2576_v20  ;;  %v638_v20 = vld [vmem:[#allocation2 + $0x230] sm:$0xff] }
  0x92   : > { %v2602_v23 = vpack.c.bf16 %v638_v20, %v636_v19  ;;  %v774_v19 = vld [vmem:[#allocation2 + $0x340] sm:$0xff]  ;;  %v777_v20 = vld [vmem:[#allocation2 + $0x358] sm:$0xff] }
  0x94   : > { %2579 = vmatpush1.bf16.msra.mxu0 %v2578_v25  ;;  %v640_v25 = vld [vmem:[#allocation2 + $0x240] sm:$0xff] }
  0x95   : > { %2581 = vmatprep.subr.bf16.mxu0 %v2580_v28  ;;  %v642_v28 = vld [vmem:[#allocation2 + $0x250] sm:$0xff] }
  0x96   : > { %v2606_v31 = vpack.c.bf16 %v642_v28, %v640_v25  ;;  %v778_v25 = vld [vmem:[#allocation2 + $0x360] sm:$0xff]  ;;  %v781_v28 = vld [vmem:[#allocation2 + $0x378] sm:$0xff] }
  0x98   : > { %2583 = vmatpush1.bf16.msra.mxu0 %v2582_v33  ;;  %v644_v33 = vld [vmem:[#allocation2 + $0x260] sm:$0xff] }
  0x99   : > { %2585 = vmatprep.subr.bf16.mxu0 %v2584_v34  ;;  %v646_v34 = vld [vmem:[#allocation2 + $0x270] sm:$0xff] }
  0x9a   : > { %v2610_v38 = vpack.c.bf16 %v646_v34, %v644_v33  ;;  %v782_v33 = vld [vmem:[#allocation2 + $0x380] sm:$0xff]  ;;  %v785_v34 = vld [vmem:[#allocation2 + $0x398] sm:$0xff] }
  0x9c   : > { %2587 = vmatpush1.bf16.msra.mxu0 %v2586_v40  ;;  %v648_v40 = vld [vmem:[#allocation2 + $0x280] sm:$0xff] }
  0x9d   : > { %2589 = vmatprep.subr.bf16.mxu0 %v2588_v45  ;;  %v655_v45 = vld [vmem:[#allocation2 + $0x2b8] sm:$0xff]  ;;  %v2614_v46 = vpack.c.bf16 %v650_v41, %v648_v40  ;;  %v786_v40 = vld [vmem:[#allocation2 + $0x3a0] sm:$0xff] }
  0x9e   : > { %v2616_v47 = vpack.c.bf16 %v655_v45, %v653_v42  ;;  %v789_v42 = vld [vmem:[#allocation2 + $0x3b8] sm:$0xff]  ;;  %v893_v45 = vld [vmem:[#allocation2 + $0x3c8] sm:$0xff] }
  0xa0   : > { %2591 = vmatpush1.bf16.msra.mxu0 %v2590_v61  ;;  %v765_v61 = vld [vmem:[#allocation2 + $0x2f8] sm:$0xff] }
  0xa1   : > { %572 = vmatprep.subr.mxu0 %v407_v3  ;;  %v2620_v3 = vpack.c.bf16 %v763_v55, %v761_v54  ;;  %v2624_v7 = vpack.c.bf16 %v767_v63, %v765_v61  ;;  %v903_v61 = vld [vmem:[#allocation2 + $0x418] sm:$0xff] }
  0xa4   : > { %573 = vmatpush1.msra.mxu0 %v406_v10  ;;  %v2626_v10 = vpack.c.bf16 %v766_v9, %v764_v8  ;;  %v906_v9 = vld [vmem:[#allocation2 + $0x430] sm:$0xff] }
  0xa5   : > { %2593 = vmatprep.subr.bf16.mxu0 %v2592_v11  ;;  %2453 = vmatmul.mubr.msk.f32.vlgmr.msra.gmra.mrb[0].mxu0 %vm448_vm3, %v3562_v26  ;;  %v769_v26 = vld [vmem:[#allocation2 + $0x318] sm:$0xff]  ;;  %v663_v11 = vsel %vm658_vm4, %v660_v57, %v662_v6  ;;  %v896_v57 = vld [vmem:[#allocation2 + $0x3e0] sm:$0xff] }
  0xa6   : > { %2595 = vmatpush1.bf16.msra.mxu0 %v2594_v59  ;;  %614 = vmatprep.mubr.f32.mxu0 %v3350_v0  ;;  %v2654_v63 = vpack.c.bf16 %v898_v58, %v896_v57  ;;  %v1430_v57 = vld [vmem:[#allocation7 + $0x8] sm:$0xff]  ;;  %v3351_v58 = vmov 0.0|0.0  }
  0xa7   : > { %2597 = vmatprep.subr.bf16.mxu0 %v2596_v12  ;;  %v768_v12 = vld [vmem:[#allocation2 + $0x310] sm:$0xff] }
  0xa8   : > { %v2630_v16 = vpack.c.bf16 %v770_v13, %v768_v12  ;;  %v913_v12 = vld [vmem:[#allocation2 + $0x468] sm:$0xff]  ;;  %v915_v13 = vld [vmem:[#allocation2 + $0x478] sm:$0xff] }
  0xa9   : > { %2454 = vmatmul.mubr.msk.f32.gmra.mrb[2].mxu0 %vm448_vm3, %v3565_v27  ;;  %v771_v27 = vld [vmem:[#allocation2 + $0x328] sm:$0xff] }
  0xaa   : > { %2599 = vmatpush1.bf16.msra.mxu0 %v2598_v17  ;;  %620 = vmatprep.mubr.f32.mxu0 %v3350_v0  ;;  %v2628_v59 = vpack.c.bf16 %v771_v27, %v769_v26  ;;  %v2632_v17 = vpack.c.bf16 %v775_v15, %v773_v14  ;;  %v909_v26 = vld [vmem:[#allocation2 + $0x448] sm:$0xff]  ;;  %v911_v27 = vld [vmem:[#allocation2 + $0x458] sm:$0xff]  ;;  %v2668_v15 = vpack.c.bf16 %v915_v13, %v913_v12  ;;  %v1443_v13 = vld [vmem:[#allocation7 + $0x70] sm:$0xff] }
  0xab   : > { %2601 = vmatprep.subr.bf16.mxu0 %v2600_v18  ;;  %v772_v18 = vld [vmem:[#allocation2 + $0x330] sm:$0xff] }
  0xac   : > { %v2634_v22 = vpack.c.bf16 %v774_v19, %v772_v18  ;;  %v917_v18 = vld [vmem:[#allocation2 + $0x488] sm:$0xff] }
  0xad   : > { %2455 = vmatmul.mubr.msk.f32.gmra.mrb[4].mxu0 %vm448_vm3, %v3573_v43  ;;  %v919_v43 = vld [vmem:[#allocation2 + $0x498] sm:$0xff] }
  0xae   : > { %2603 = vmatpush1.bf16.msra.mxu0 %v2602_v23  ;;  %734 = vmatprep.mubr.f32.mxu0 %v3350_v0  ;;  %v2636_v23 = vpack.c.bf16 %v779_v21, %v777_v20  ;;  %v2672_v19 = vpack.c.bf16 %v919_v43, %v917_v18  ;;  %v916_v20 = vld [vmem:[#allocation2 + $0x480] sm:$0xff]  ;;  %v918_v21 = vld [vmem:[#allocation2 + $0x490] sm:$0xff] }
  0xaf   : > { %2605 = vmatprep.subr.bf16.mxu0 %v2604_v24  ;;  %v776_v24 = vld [vmem:[#allocation2 + $0x350] sm:$0xff]  ;;  %v1447_v43 = vld [vmem:[#allocation7 + $0x90] sm:$0xff] }
  0xb0   : > { %v2638_v30 = vpack.c.bf16 %v778_v25, %v776_v24  ;;  %v920_v24 = vld [vmem:[#allocation2 + $0x4a0] sm:$0xff]  ;;  %v1097_v25 = vld [vmem:[#allocation5 + $0x48] sm:$0xff] }
  0xb2   : > { %2607 = vmatpush1.bf16.msra.mxu0 %v2606_v31  ;;  %v2640_v31 = vpack.c.bf16 %v783_v29, %v781_v28  ;;  %v1099_v28 = vld [vmem:[#allocation5 + $0x58] sm:$0xff] }
  0xb3   : > { %2609 = vmatprep.subr.bf16.mxu0 %v2608_v32  ;;  %v780_v32 = vld [vmem:[#allocation2 + $0x370] sm:$0xff]  ;;  %v2684_v29 = vpack.c.bf16 %v1099_v28, %v1097_v25 }
  0xb4   : > { %v2642_v37 = vpack.c.bf16 %v782_v33, %v780_v32  ;;  %v1101_v33 = vld [vmem:[#allocation5 + $0x68] sm:$0xff] }
  0xb5   : > { %2685 = vmatprep.subr.bf16.mxu1 %v2684_v29 }
  0xb6   : > { %2611 = vmatpush1.bf16.msra.mxu0 %v2610_v38  ;;  %v2644_v38 = vpack.c.bf16 %v787_v35, %v785_v34  ;;  %v1100_v35 = vld [vmem:[#allocation5 + $0x60] sm:$0xff] }
  0xb7   : > { %2613 = vmatprep.subr.bf16.mxu0 %v2612_v39  ;;  %v784_v39 = vld [vmem:[#allocation2 + $0x390] sm:$0xff] }
  0xb8   : > { %v2646_v41 = vpack.c.bf16 %v786_v40, %v784_v39  ;;  %v1107_v39 = vld [vmem:[#allocation5 + $0x98] sm:$0xff] }
  0xba   : > { %2615 = vmatpush1.bf16.msra.mxu0 %v2614_v46  ;;  %v895_v46 = vld [vmem:[#allocation2 + $0x3d8] sm:$0xff] }
  0xbb   : > { %2617 = vmatprep.subr.bf16.mxu0 %v2616_v47  ;;  %v892_v47 = vld [vmem:[#allocation2 + $0x3c0] sm:$0xff]  ;;  %v2648_v54 = vpack.c.bf16 %v895_v46, %v893_v45  ;;  %v1109_v45 = vld [vmem:[#allocation5 + $0xa8] sm:$0xff]  ;;  %v1111_v46 = vld [vmem:[#allocation5 + $0xb8] sm:$0xff] }
  0xbc   : > { %v2650_v55 = vpack.c.bf16 %v894_v48, %v892_v47  ;;  %v2696_v47 = vpack.c.bf16 %v1111_v46, %v1109_v45  ;;  %v1108_v48 = vld [vmem:[#allocation5 + $0xa0] sm:$0xff]  ;;  %v1065_v45 = vld [vmem:[#allocation5 + $0xe8] sm:$0xff]  ;;  %v1067_v46 = vld [vmem:[#allocation5 + $0xf8] sm:$0xff] }
  0xbe   : > { %2619 = vmatpush1.bf16.msra.mxu0 %v2618_v51  ;;  %v899_v51 = vld [vmem:[#allocation2 + $0x3f8] sm:$0xff] }
  0xbf   : > { %698 = vmatprep.subr.mxu0 %v657_v52  ;;  %v788_v52 = vld [vmem:[#allocation2 + $0x3b0] sm:$0xff]  ;;  %v2652_v56 = vpack.c.bf16 %v899_v51, %v897_v50  ;;  %v1110_v50 = vld [vmem:[#allocation5 + $0xb0] sm:$0xff] }
  0xc0   : > { %v2698_v51 = vpack.c.bf16 %v1110_v50, %v1108_v48 }
  0xc2   : > { %699 = vmatpush1.msra.mxu0 %v656_v2  ;;  %v2656_v2 = vpack.c.bf16 %v903_v61, %v901_v60  ;;  %v1431_v61 = vld [vmem:[#allocation7 + $0x10] sm:$0xff] }
  0xc3   : > { %2621 = vmatprep.subr.bf16.mxu0 %v2620_v3  ;;  %2456 = vmatmul.mubr.msk.f32.vlgmr.msra.gmra.mrb[0].mxu0 %vm448_vm3, %v661_v4  ;;  %v900_v3 = vld [vmem:[#allocation2 + $0x400] sm:$0xff]  ;;  %v902_v4 = vld [vmem:[#allocation2 + $0x410] sm:$0xff] }
  0xc4   : > { %2623 = vmatpush1.bf16.msra.mxu0 %v2622_v5  ;;  %740 = vmatprep.mubr.f32.mxu0 %v3350_v0  ;;  %v905_v5 = vld [vmem:[#allocation2 + $0x428] sm:$0xff] }
  0xc5   : > { %2625 = vmatprep.subr.bf16.mxu0 %v2624_v7  ;;  %v2658_v7 = vpack.c.bf16 %v902_v4, %v900_v3  ;;  %v1433_v3 = vld [vmem:[#allocation7 + $0x20] sm:$0xff]  ;;  %v1434_v4 = vld [vmem:[#allocation7 + $0x28] sm:$0xff] }
  0xc7   : > { %2457 = vmatmul.mubr.msk.f32.gmra.mrb[2].mxu0 %vm448_vm3, %v663_v11  ;;  %v908_v11 = vld [vmem:[#allocation2 + $0x440] sm:$0xff] }
  0xc8   : > { %2627 = vmatpush1.bf16.msra.mxu0 %v2626_v10  ;;  %746 = vmatprep.mubr.f32.mxu0 %v3350_v0 }
  0xc9   : > { %2629 = vmatprep.subr.bf16.mxu0 %v2628_v59  ;;  %v910_v59 = vld [vmem:[#allocation2 + $0x450] sm:$0xff] }
  0xca   : > { %v2666_v14 = vpack.c.bf16 %v910_v59, %v908_v11  ;;  %v1441_v11 = vld [vmem:[#allocation7 + $0x60] sm:$0xff]  ;;  %v1442_v59 = vld [vmem:[#allocation7 + $0x68] sm:$0xff] }
  0xcb   : > { %2458 = vmatmul.mubr.msk.f32.gmra.mrb[4].mxu0 %vm448_vm3, %v662_v6  ;;  %v907_v6 = vld [vmem:[#allocation2 + $0x438] sm:$0xff]  ;;  %v2767_v12 = vpack.c.bf16 %v1442_v59, %v1441_v11  ;;  %v1075_v59 = vld [vmem:[#allocation5 + $0x138] sm:$0xff] }
  0xcc   : > { %2631 = vmatpush1.bf16.msra.mxu0 %v2630_v16  ;;  %866 = vmatprep.mubr.f32.mxu0 %v3350_v0  ;;  %v2660_v8 = vpack.c.bf16 %v907_v6, %v905_v5  ;;  %v912_v16 = vld [vmem:[#allocation2 + $0x460] sm:$0xff]  ;;  %v2755_v5 = vpack.c.bf16 %v1434_v4, %v1433_v3  ;;  %v1073_v11 = vld [vmem:[#allocation5 + $0x128] sm:$0xff] }
  0xcd   : > { %2633 = vmatprep.subr.bf16.mxu0 %v2632_v17  ;;  %v914_v17 = vld [vmem:[#allocation2 + $0x470] sm:$0xff]  ;;  %v1435_v6 = vld [vmem:[#allocation7 + $0x30] sm:$0xff] }
  0xd0   : > { %2635 = vmatpush1.bf16.msra.mxu0 %v2634_v22  ;;  %v2674_v22 = vpack.c.bf16 %v918_v21, %v916_v20  ;;  %v1449_v20 = vld [vmem:[#allocation7 + $0xa0] sm:$0xff]  ;;  %v1450_v21 = vld [vmem:[#allocation7 + $0xa8] sm:$0xff] }
  0xd1   : > { %2637 = vmatprep.subr.bf16.mxu0 %v2636_v23  ;;  %v921_v23 = vld [vmem:[#allocation2 + $0x4a8] sm:$0xff] }
  0xd4   : > { %2639 = vmatpush1.bf16.msra.mxu0 %v2638_v30  ;;  %v1096_v30 = vld [vmem:[#allocation5 + $0x40] sm:$0xff] }
  0xd5   : > { %2641 = vmatprep.subr.bf16.mxu0 %v2640_v31  ;;  %v1098_v31 = vld [vmem:[#allocation5 + $0x50] sm:$0xff] }
  0xd6   : > { %v2686_v32 = vpack.c.bf16 %v1098_v31, %v1096_v30  ;;  %v1056_v31 = vlaneseq }
  0xd8   : > { %2643 = vmatpush1.bf16.msra.mxu0 %v2642_v37  ;;  %2687 = vmatpush1.bf16.msra.mxu1 %v2686_v32  ;;  %v1102_v37 = vld [vmem:[#allocation5 + $0x70] sm:$0xff] }
  0xd9   : > { %2645 = vmatprep.subr.bf16.mxu0 %v2644_v38  ;;  %v2690_v38 = vpack.c.bf16 %v1102_v37, %v1100_v35 }
  0xdc   : > { %2647 = vmatpush1.bf16.msra.mxu0 %v2646_v41  ;;  %v1106_v41 = vld [vmem:[#allocation5 + $0x90] sm:$0xff] }
  0xdd   : > { %830 = vmatprep.subr.mxu0 %v789_v42 }
  0xe0   : > { %831 = vmatpush1.msra.mxu0 %v788_v52  ;;  %v1061_v52 = vld [vmem:[#allocation5 + $0xc8] sm:$0xff] }
  0xe1   : > { %2649 = vmatprep.subr.bf16.mxu0 %v2648_v54  ;;  %2459 = vmatmul.mubr.msk.f32.vlgmr.msra.gmra.mrb[0].mxu0 %vm448_vm3, %v3570_v36  ;;  %v904_v36 = vld [vmem:[#allocation2 + $0x420] sm:$0xff]  ;;  %v1063_v54 = vld [vmem:[#allocation5 + $0xd8] sm:$0xff] }
  0xe2   : > { %2651 = vmatpush1.bf16.msra.mxu0 %v2650_v55  ;;  %872 = vmatprep.mubr.f32.mxu0 %v3350_v0  ;;  %v2662_v10 = vpack.c.bf16 %v906_v9, %v904_v36  ;;  %v2700_v55 = vpack.c.bf16 %v1063_v54, %v1061_v52  ;;  %v1437_v36 = vld [vmem:[#allocation7 + $0x40] sm:$0xff]  ;;  %v1438_v9 = vld [vmem:[#allocation7 + $0x48] sm:$0xff] }
  0xe3   : > { %2653 = vmatprep.subr.bf16.mxu0 %v2652_v56  ;;  %v1429_v56 = vld [vmem:[#allocation7] sm:$0xff] }
  0xe4   : > { %v2749_v60 = vpack.c.bf16 %v1430_v57, %v1429_v56  ;;  %v1064_v56 = vld [vmem:[#allocation5 + $0xe0] sm:$0xff]  ;;  %v1066_v57 = vld [vmem:[#allocation5 + $0xf0] sm:$0xff] }
  0xe5   : > { %2460 = vmatmul.mubr.msk.f32.gmra.mrb[2].mxu0 %vm448_vm3, %v3579_v49  ;;  %v2664_v49 = vpack.c.bf16 %v911_v27, %v909_v26  ;;  %v2761_v26 = vpack.c.bf16 %v1438_v9, %v1437_v36  ;;  %v1439_v27 = vld [vmem:[#allocation7 + $0x50] sm:$0xff] }
  0xe6   : > { %2655 = vmatpush1.bf16.msra.mxu0 %v2654_v63  ;;  %878 = vmatprep.mubr.f32.mxu0 %v3350_v0  ;;  %v1432_v63 = vld [vmem:[#allocation7 + $0x18] sm:$0xff] }
  0xe7   : > { %2657 = vmatprep.subr.bf16.mxu0 %v2656_v2  ;;  %v2752_v2 = vpack.c.bf16 %v1432_v63, %v1431_v61  ;;  %v1069_v63 = vld [vmem:[#allocation5 + $0x108] sm:$0xff] }
  0xe9   : > { %2461 = vmatmul.mubr.msk.f32.gmra.mrb[4].mxu0 %vm448_vm3, %v794_v44  ;;  %v2670_v44 = vpack.c.bf16 %v914_v17, %v912_v16  ;;  %v1445_v16 = vld [vmem:[#allocation7 + $0x80] sm:$0xff]  ;;  %v1446_v17 = vld [vmem:[#allocation7 + $0x88] sm:$0xff] }
  0xea   : > { %2659 = vmatpush1.bf16.msra.mxu0 %v2658_v7  ;;  %1001 = vmatprep.mubr.f32.mxu0 %v3350_v0  ;;  %v1436_v7 = vld [vmem:[#allocation7 + $0x38] sm:$0xff]  ;;  %v2773_v18 = vpack.c.bf16 %v1446_v17, %v1445_v16  ;;  %v2712_v16 = vpack.c.bf16 %v1075_v59, %v1073_v11  ;;  %v1072_v17 = vld [vmem:[#allocation5 + $0x120] sm:$0xff] }
  0xeb   : > { %2661 = vmatprep.subr.bf16.mxu0 %v2660_v8  ;;  %v2758_v8 = vpack.c.bf16 %v1436_v7, %v1435_v6  ;;  %v1068_v6 = vld [vmem:[#allocation5 + $0x100] sm:$0xff]  ;;  %v1070_v7 = vld [vmem:[#allocation5 + $0x110] sm:$0xff] }
  0xee   : > { %2663 = vmatpush1.bf16.msra.mxu0 %v2662_v10  ;;  %v1440_v10 = vld [vmem:[#allocation7 + $0x58] sm:$0xff] }
  0xef   : > { %2665 = vmatprep.subr.bf16.mxu0 %v2664_v49  ;;  %v2764_v49 = vpack.c.bf16 %v1440_v10, %v1439_v27 }
  0xf2   : > { %2667 = vmatpush1.bf16.msra.mxu0 %v2666_v14  ;;  %v1444_v14 = vld [vmem:[#allocation7 + $0x78] sm:$0xff] }
  0xf3   : > { %2669 = vmatprep.subr.bf16.mxu0 %v2668_v15  ;;  %v2770_v15 = vpack.c.bf16 %v1444_v14, %v1443_v13 }
  0xf6   : > { %2671 = vmatpush1.bf16.msra.mxu0 %v2670_v44  ;;  %v1448_v44 = vld [vmem:[#allocation7 + $0x98] sm:$0xff] }
  0xf7   : > { %2673 = vmatprep.subr.bf16.mxu0 %v2672_v19  ;;  %v2776_v19 = vpack.c.bf16 %v1448_v44, %v1447_v43  ;;  %v1077_v44 = vld [vmem:[#allocation5 + $0x148] sm:$0xff] }
  0xfa   : > { %2675 = vmatpush1.bf16.msra.mxu0 %v2674_v22  ;;  %v2779_v22 = vpack.c.bf16 %v1450_v21, %v1449_v20 }
  0xfb   : > { %965 = vmatprep.subr.mxu0 %v921_v23 }
  0xfe   : > { %966 = vmatpush1.msra.mxu0 %v920_v24 }
  0xff   : > { %2462 = vmatmul.mubr.msk.f32.vlgmr.msra.gmra.mrb[0].mxu0 %vm448_vm3, %v3584_v53  ;;  %v1103_v53 = vld [vmem:[#allocation5 + $0x78] sm:$0xff]  ;;  %2748 = vmatprep.subr.bf16.mxu0 %v3351_v58 }
 0x100   : > { %1007 = vmatprep.mubr.f32.mxu0 %v3350_v0  ;;  %v2688_v34 = vpack.c.bf16 %v1103_v53, %v1101_v33  ;;  %2750 = vmatpush1.bf16.msra.mxu0 %v2749_v60 }
 0x101   : > { %2751 = vmatprep.subr.bf16.mxu0 %v3351_v58 }
 0x102   : > { %2689 = vmatprep.subr.bf16.mxu1 %v2688_v34 }
 0x103   : > { %2463 = vmatmul.mubr.msk.f32.gmra.mrb[2].mxu0 %vm448_vm3, %v3592_v1  ;;  %2691 = vmatpush1.bf16.msra.mxu1 %v2690_v38  ;;  %v1105_v1 = vld [vmem:[#allocation5 + $0x88] sm:$0xff]  ;;  %v2465_v38 = vld [vmem:[%s3931_s2] ss:$0 sm:$0xff] }
 0x104   : > { %1013 = vmatprep.mubr.f32.mxu0 %v3350_v0  ;;  %v2692_v40 = vpack.c.bf16 %v1107_v39, %v1105_v1  ;;  %2753 = vmatpush1.bf16.msra.mxu0 %v2752_v2  ;;  %v3663_v1 = vshrl.u32 %v1056_v31, 7  ;;  %v1071_v2 = vld [vmem:[#allocation5 + $0x118] sm:$0xff]  ;;  %v1082_v31 = vld [vmem:[#allocation5 + $0x170] sm:$0xff] }
 0x105   : > { %2754 = vmatprep.subr.bf16.mxu0 %v3351_v58  ;;  %v2708_v9 = vpack.c.bf16 %v1071_v2, %v1069_v63  ;;  %v1316_v63 = vld [vmem:[#allocation5 + $0x218] sm:$0xff] }
 0x106   : > { %2693 = vmatprep.subr.bf16.mxu1 %v2692_v40  ;;  %vm1084_vm5 = vcmp.ge.s32.totalorder %v3663_v1, 2  ;;  %v1058_v11 = vadd.s32 8, %v3663_v1 }
 0x107   : > { %2464 = vmatmul.mubr.msk.f32.gmra.mrb[4].mxu0 %vm448_vm3, %v3607_v62  ;;  %v1104_v62 = vld [vmem:[#allocation5 + $0x80] sm:$0xff] }
 0x108   : > { %v2694_v42 = vpack.c.bf16 %v1106_v41, %v1104_v62  ;;  %2756 = vmatpush1.bf16.msra.mxu0 %v2755_v5  ;;  %v1060_v62 = vld [vmem:[#allocation5 + $0xc0] sm:$0xff]  ;;  %v1062_v41 = vld [vmem:[#allocation5 + $0xd0] sm:$0xff]  ;;  %v2706_v5 = vpack.c.bf16 %v1066_v57, %v1064_v56  ;;  %vm1286_vm7 = vcmp.lt.s32.totalorder %v1058_v11, 14 }
 0x109   : > { %2757 = vmatprep.subr.bf16.mxu0 %v3351_v58  ;;  %v2702_v52 = vpack.c.bf16 %v1062_v41, %v1060_v62  ;;  %v1301_v41 = vld [vmem:[#allocation5 + $0x1a0] sm:$0xff] }
 0x10a   : > { %2695 = vmatpush1.bf16.msra.mxu1 %v2694_v42  ;;  %v1309_v57 = vld [vmem:[#allocation5 + $0x1e0] sm:$0xff] }
 0x10b   : > { %2697 = vmatprep.subr.bf16.mxu1 %v2696_v47 }
 0x10c   : > { %2759 = vmatpush1.bf16.msra.mxu0 %v2758_v8 }
 0x10d   : > { %2760 = vmatprep.subr.bf16.mxu0 %v3351_v58 }
 0x10e   : > { %2699 = vmatpush1.bf16.msra.mxu1 %v2698_v51 }
 0x10f   : > { %2701 = vmatprep.subr.bf16.mxu1 %v2700_v55  ;;  %v2704_v55 = vpack.c.bf16 %v1067_v46, %v1065_v45  ;;  %v1306_v45 = vld [vmem:[#allocation5 + $0x1c8] sm:$0xff]  ;;  %v1308_v46 = vld [vmem:[#allocation5 + $0x1d8] sm:$0xff] }
 0x110   : > { %2762 = vmatpush1.bf16.msra.mxu0 %v2761_v26 }
 0x111   : > { %2763 = vmatprep.subr.bf16.mxu0 %v3351_v58 }
 0x114   : > { %2765 = vmatpush1.bf16.msra.mxu0 %v2764_v49 }
 0x115   : > { %2766 = vmatprep.subr.bf16.mxu0 %v3351_v58 }
 0x118   : > { %2768 = vmatpush1.bf16.msra.mxu0 %v2767_v12  ;;  %v2710_v12 = vpack.c.bf16 %v1070_v7, %v1068_v6  ;;  %v1318_v6 = vld [vmem:[#allocation5 + $0x228] sm:$0xff]  ;;  %v1320_v7 = vld [vmem:[#allocation5 + $0x238] sm:$0xff] }
 0x119   : > { %2769 = vmatprep.subr.bf16.mxu0 %v3351_v58 }
 0x11c   : > { %2771 = vmatpush1.bf16.msra.mxu0 %v2770_v15 }
 0x11d   : > { %2772 = vmatprep.subr.bf16.mxu0 %v3351_v58 }
 0x120   : > { %2774 = vmatpush1.bf16.msra.mxu0 %v2773_v18  ;;  %v1074_v18 = vld [vmem:[#allocation5 + $0x130] sm:$0xff] }
 0x121   : > { %2775 = vmatprep.subr.bf16.mxu0 %v3351_v58  ;;  %v2714_v20 = vpack.c.bf16 %v1074_v18, %v1072_v17  ;;  %v1737_v17 = vld [vmem:[#allocation7 + $0x268] sm:$0xff] }
 0x124   : > { %2777 = vmatpush1.bf16.msra.mxu0 %v2776_v19  ;;  %v1079_v19 = vld [vmem:[#allocation5 + $0x158] sm:$0xff] }
 0x125   : > { %2778 = vmatprep.subr.bf16.mxu0 %v3351_v58  ;;  %v2716_v21 = vpack.c.bf16 %v1079_v19, %v1077_v44  ;;  %v1738_v19 = vld [vmem:[#allocation7 + $0x270] sm:$0xff] }
 0x128   : > { %2780 = vmatpush1.bf16.msra.mxu0 %v2779_v22  ;;  %v1076_v22 = vld [vmem:[#allocation5 + $0x140] sm:$0xff] }
 0x129   : > { %2781 = vmatprep.subr.bf16.mxu0 %v3351_v58 }
 0x1d2   : > { %v1003_v23 = vpop.f32.mrb[0].mxu0 }
 0x1d3   : > { %v1005_v24 = vpop.f32.mrb[1].mxu0 }
 0x1d4   : > { %v1026_v25 = vmax.f32 %v1003_v23, %v1005_v24  ;;  %v1078_v23 = vld [vmem:[#allocation5 + $0x150] sm:$0xff]  ;;  %v1081_v24 = vld [vmem:[#allocation5 + $0x168] sm:$0xff] }
 0x1d6   : > { %v1009_v28 = vpop.f32.mrb[2].mxu0  ;;  %v1032_v32 = vrot.slane %v1026_v25, 1 }
 0x1d7   : > { %v1011_v29 = vpop.f32.mrb[3].mxu0 }
 0x1d8   : > { %v1027_v30 = vmax.f32 %v1009_v28, %v1011_v29  ;;  %v2718_v28 = vpack.c.bf16 %v1078_v23, %v1076_v22  ;;  %v1741_v22 = vld [vmem:[#allocation7 + $0x288] sm:$0xff] }
 0x1da   : > { %v1033_v33 = vrot.slane %v1027_v30, 1  ;;  %v1015_v53 = vpop.f32.mrb[4].mxu0 }
 0x1db   : > { %v1017_v34 = vpop.f32.mrb[5].mxu0 }
 0x1dc   : > { %v1034_v35 = vsel %vm442_vm2, %v1032_v32, %v1033_v33  ;;  %v1028_v37 = vmax.f32 %v1015_v53, %v1017_v34  ;;  %v1298_v32 = vld [vmem:[#allocation5 + $0x188] sm:$0xff] }
 0x1dd   : > { %v1040_v39 = vmax.f32 %v1026_v25, %v1034_v35  ;;  %v1083_v25 = vld [vmem:[#allocation5 + $0x178] sm:$0xff]  ;;  %v1297_v35 = vld [vmem:[#allocation5 + $0x180] sm:$0xff] }
 0x1de   : > { %v1035_v40 = vrot.slane %v1028_v37, 1  ;;  %v2720_v29 = vpack.c.bf16 %v1083_v25, %v1081_v24  ;;  %v1742_v24 = vld [vmem:[#allocation7 + $0x290] sm:$0xff] }
 0x1df   : > { %v1050_v42 = vadd.f32 %v2465_v38, %v1040_v39  ;;  %v1304_v39 = vld [vmem:[#allocation5 + $0x1b8] sm:$0xff] }
 0x1e0   : > { %v1036_v47 = vsel %vm442_vm2, %v1033_v33, %v1035_v40  ;;  %v1042_v48 = vmax.f32 %v1028_v37, %v1035_v40  ;;  %v1300_v33 = vld [vmem:[#allocation5 + $0x198] sm:$0xff]  ;;  %v1299_v37 = vld [vmem:[#allocation5 + $0x190] sm:$0xff] }
 0x1e1   : > { %v1041_v50 = vmax.f32 %v1027_v30, %v1036_v47  ;;  %v1053_v51 = vmax.f32 %v1050_v42, 0.0  ;;  %v1080_v30 = vld [vmem:[#allocation5 + $0x160] sm:$0xff]  ;;  %v2724_v34 = vpack.c.bf16 %v1300_v33, %v1298_v32  ;;  %v2726_v40 = vpack.c.bf16 %v1299_v37, %v1297_v35  ;;  %v1303_v42 = vld [vmem:[#allocation5 + $0x1b0] sm:$0xff]  ;;  %v1747_v32 = vld [vmem:[#allocation7 + $0x2b8] sm:$0xff] }
 0x1e2   : > { %v1052_v54 = vadd.f32 %v2465_v38, %v1042_v48  ;;  %v2722_v53 = vpack.c.bf16 %v1082_v31, %v1080_v30  ;;  %v2730_v47 = vpack.c.bf16 %v1303_v42, %v1301_v41  ;;  %v2732_v48 = vpack.c.bf16 %v1308_v46, %v1306_v45  ;;  %v1746_v31 = vld [vmem:[#allocation7 + $0x2b0] sm:$0xff]  ;;  %v1452_v45 = vld [vmem:[#allocation7 + $0xb8] sm:$0xff] }
 0x1e3   : > { %v1086_v60 = vsel %vm1084_vm5, %v1053_v51, 0.0  ;;  %v1051_v61 = vadd.f32 %v2465_v38, %v1041_v50  ;;  %v1199_v26 = vrot.slane %v1053_v51, 2  ;;  %v1287_v27 = vrot.slane %v1053_v51, 4  ;;  %v1302_v38 = vld [vmem:[#allocation5 + $0x1a8] sm:$0xff]  ;;  %v1305_v50 = vld [vmem:[#allocation5 + $0x1c0] sm:$0xff]  ;;  %v1307_v51 = vld [vmem:[#allocation5 + $0x1d0] sm:$0xff] }
 0x1e4   : > { %v1055_v3 = vmax.f32 %v1052_v54, 0.0  ;;  %2466 = vmatmul.mubr.msk.f32.vlgmr.msra.gmra.mrb[0].mxu1 %vm1112_vm6, %v1086_v60  ;;  %v2728_v62 = vpack.c.bf16 %v1304_v39, %v1302_v38  ;;  %v1312_v54 = vld [vmem:[#allocation5 + $0x1f8] sm:$0xff]  ;;  %v1311_v60 = vld [vmem:[#allocation5 + $0x1f0] sm:$0xff]  ;;  %v2878_v33 = vpack.c.bf16 %v1747_v32, %v1746_v31  ;;  %v1841_v32 = vld [vmem:[#allocation7 + $0x340] sm:$0xff] }
 0x1e5   : > { %2703 = vmatpush1.bf16.msra.mxu1 %v2702_v52  ;;  %1189 = vmatprep.mubr.f32.mxu1 %v3350_v0  ;;  %v1054_v4 = vmax.f32 %v1051_v61, 0.0  ;;  %v1310_v52 = vld [vmem:[#allocation5 + $0x1e8] sm:$0xff]  ;;  %v2738_v2 = vpack.c.bf16 %v1311_v60, %v1309_v57  ;;  %v1750_v37 = vld [vmem:[#allocation7 + $0x2d0] sm:$0xff]  ;;  %v1751_v38 = vld [vmem:[#allocation7 + $0x2d8] sm:$0xff] }
 0x1e6   : > { %v1202_v8 = vrot.slane %v1055_v3, 2  ;;  %v1290_v36 = vrot.slane %v1055_v3, 4  ;;  %2705 = vmatprep.subr.bf16.mxu1 %v2704_v55  ;;  %v2734_v55 = vpack.c.bf16 %v1307_v51, %v1305_v50  ;;  %v2736_v56 = vpack.c.bf16 %v1312_v54, %v1310_v52  ;;  %v1314_v61 = vld [vmem:[#allocation5 + $0x208] sm:$0xff]  ;;  %v1451_v42 = vld [vmem:[#allocation7 + $0xb0] sm:$0xff] }
 0x1e7   : > { %v1200_v10 = vrot.slane %v1054_v4, 2  ;;  %v1288_v49 = vrot.slane %v1054_v4, 4  ;;  %v2740_v3 = vpack.c.bf16 %v1316_v63, %v1314_v61  ;;  %v2884_v39 = vpack.c.bf16 %v1751_v38, %v1750_v37  ;;  %v1408_v52 = vld [vmem:[%s3933_s4] sm:$0x3]  ;;  %v1529_v63 = vld [vmem:[#allocation7 + $0xc0] sm:$0xff] }
 0x1e8   : > { %2467 = vmatmul.mubr.msk.f32.gmra.mrb[2].mxu1 %vm1112_vm6, %v1054_v4  ;;  %v1313_v4 = vld [vmem:[#allocation5 + $0x200] sm:$0xff]  ;;  %v2782_v46 = vpack.c.bf16 %v1452_v45, %v1451_v42  ;;  %v1412_v51 = vsub.s32 0, %v3663_v1  ;;  %v1416_v54 = vsub.s32 1, %v3663_v1  ;;  %v1834_v1 = vld [vmem:[#allocation7 + $0x308] sm:$0xff]  ;;  %v1843_v38 = vld [vmem:[#allocation7 + $0x350] sm:$0xff] }
 0x1e9   : > { %2707 = vmatpush1.bf16.msra.mxu1 %v2706_v5  ;;  %1272 = vmatprep.mubr.f32.mxu1 %v3350_v0  ;;  %v1201_v13 = vsel %vm658_vm4, %v1199_v26, %v1200_v10  ;;  %v1203_v14 = vsel %vm658_vm4, %v1200_v10, %v1202_v8  ;;  %v3674_v15 = vsel %vm923_vm1, %v1287_v27, %v1288_v49  ;;  %v1315_v5 = vld [vmem:[#allocation5 + $0x210] sm:$0xff]  ;;  %v1732_v10 = vld [vmem:[#allocation7 + $0x240] sm:$0xff] }
 0x1ea   : > { %2709 = vmatprep.subr.bf16.mxu1 %v2708_v9  ;;  %v3677_v43 = vsel %vm923_vm1, %v1288_v49, %v1290_v36  ;;  %v2742_v8 = vpack.c.bf16 %v1315_v5, %v1313_v4  ;;  %v2744_v36 = vpack.c.bf16 %v1320_v7, %v1318_v6  ;;  %v1317_v9 = vld [vmem:[#allocation5 + $0x220] sm:$0xff]  ;;  %v1319_v26 = vld [vmem:[#allocation5 + $0x230] sm:$0xff]  ;;  %v1733_v49 = vld [vmem:[#allocation7 + $0x248] sm:$0xff]  ;;  %2783 = vmatpush1.bf16.msra.mxu0 %v2782_v46 }
 0x1eb   : > { %v2746_v27 = vpack.c.bf16 %v1319_v26, %v1317_v9  ;;  %v2857_v59 = vpack.c.bf16 %v1733_v49, %v1732_v10  ;;  %v1295_v18 = vsel %vm1286_vm7, %v3677_v43, 0.0  ;;  %v1743_v43 = vld [vmem:[#allocation7 + $0x298] sm:$0xff]  ;;  %2784 = vmatprep.subr.bf16.mxu0 %v3351_v58  ;;  %v1531_v9 = vld [vmem:[#allocation7 + $0xd0] sm:$0xff]  ;;  %v1845_v45 = vld [vmem:[#allocation7 + $0x360] sm:$0xff] }
 0x1ec   : > { %v2872_v25 = vpack.c.bf16 %v1743_v43, %v1742_v24  ;;  %v1532_v26 = vld [vmem:[#allocation7 + $0xd8] sm:$0xff]  ;;  %v1839_v43 = vld [vmem:[#allocation7 + $0x330] sm:$0xff]  ;;  %v1846_v46 = vld [vmem:[#allocation7 + $0x368] sm:$0xff] }
 0x1ed   : > { %2711 = vmatpush1.bf16.msra.mxu1 %v2710_v12  ;;  %v1734_v12 = vld [vmem:[#allocation7 + $0x250] sm:$0xff] }
 0x1ee   : > { %2713 = vmatprep.subr.bf16.mxu1 %v2712_v16  ;;  %v1736_v16 = vld [vmem:[#allocation7 + $0x260] sm:$0xff] }
 0x1ef   : > { %v2863_v44 = vpack.c.bf16 %v1737_v17, %v1736_v16  ;;  %v1836_v16 = vld [vmem:[#allocation7 + $0x318] sm:$0xff]  ;;  %v1533_v17 = vld [vmem:[#allocation7 + $0xe0] sm:$0xff] }
 0x1f1   : > { %2715 = vmatpush1.bf16.msra.mxu1 %v2714_v20  ;;  %v1739_v20 = vld [vmem:[#allocation7 + $0x278] sm:$0xff] }
 0x1f2   : > { %2717 = vmatprep.subr.bf16.mxu1 %v2716_v21  ;;  %v1740_v21 = vld [vmem:[#allocation7 + $0x280] sm:$0xff] }
 0x1f3   : > { %v2869_v23 = vpack.c.bf16 %v1741_v22, %v1740_v21  ;;  %v1535_v21 = vld [vmem:[#allocation7 + $0xf0] sm:$0xff]  ;;  %v1536_v22 = vld [vmem:[#allocation7 + $0xf8] sm:$0xff] }
 0x1f4   : > { %v2794_v24 = vpack.c.bf16 %v1536_v22, %v1535_v21 }
 0x1f5   : > { %2719 = vmatpush1.bf16.msra.mxu1 %v2718_v28  ;;  %v1744_v28 = vld [vmem:[#allocation7 + $0x2a0] sm:$0xff] }
 0x1f6   : > { %2721 = vmatprep.subr.bf16.mxu1 %v2720_v29  ;;  %v1745_v29 = vld [vmem:[#allocation7 + $0x2a8] sm:$0xff] }
 0x1f7   : > { %v2875_v30 = vpack.c.bf16 %v1745_v29, %v1744_v28  ;;  %v1537_v28 = vld [vmem:[#allocation7 + $0x100] sm:$0xff]  ;;  %v1538_v29 = vld [vmem:[#allocation7 + $0x108] sm:$0xff] }
 0x1f8   : > { %v2797_v31 = vpack.c.bf16 %v1538_v29, %v1537_v28  ;;  %v1634_v28 = vld [vmem:[#allocation7 + $0x198] sm:$0xff] }
 0x1f9   : > { %2723 = vmatpush1.bf16.msra.mxu1 %v2722_v53  ;;  %v1748_v53 = vld [vmem:[#allocation7 + $0x2c0] sm:$0xff] }
 0x1fa   : > { %2725 = vmatprep.subr.bf16.mxu1 %v2724_v34  ;;  %v1749_v34 = vld [vmem:[#allocation7 + $0x2c8] sm:$0xff] }
 0x1fb   : > { %v2881_v35 = vpack.c.bf16 %v1749_v34, %v1748_v53  ;;  %v1539_v53 = vld [vmem:[#allocation7 + $0x110] sm:$0xff]  ;;  %v1540_v34 = vld [vmem:[#allocation7 + $0x118] sm:$0xff] }
 0x1fc   : > { %2468 = vmatmul.mubr.msk.f32.vlgmr.msra.gmra.mrb[0].mxu1 %vm1112_vm6, %v1201_v13  ;;  %v1735_v13 = vld [vmem:[#allocation7 + $0x258] sm:$0xff]  ;;  %v2800_v37 = vpack.c.bf16 %v1540_v34, %v1539_v53  ;;  %v1635_v53 = vld [vmem:[#allocation7 + $0x1a0] sm:$0xff]  ;;  %v1636_v34 = vld [vmem:[#allocation7 + $0x1a8] sm:$0xff] }
 0x1fd   : > { %2727 = vmatpush1.bf16.msra.mxu1 %v2726_v40  ;;  %1278 = vmatprep.mubr.f32.mxu1 %v3350_v0  ;;  %v1752_v40 = vld [vmem:[#allocation7 + $0x2e0] sm:$0xff] }
 0x1fe   : > { %2729 = vmatprep.subr.bf16.mxu1 %v2728_v62  ;;  %v1753_v62 = vld [vmem:[#allocation7 + $0x2e8] sm:$0xff] }
 0x1ff   : > { %v2887_v41 = vpack.c.bf16 %v1753_v62, %v1752_v40  ;;  %v1541_v40 = vld [vmem:[#allocation7 + $0x120] sm:$0xff]  ;;  %v1542_v62 = vld [vmem:[#allocation7 + $0x128] sm:$0xff] }
 0x200   : > { %2469 = vmatmul.mubr.msk.f32.gmra.mrb[2].mxu1 %vm1112_vm6, %v1203_v14  ;;  %v2860_v14 = vpack.c.bf16 %v1735_v13, %v1734_v12  ;;  %v2788_v13 = vpack.c.bf16 %v1532_v26, %v1531_v9  ;;  %v2803_v42 = vpack.c.bf16 %v1542_v62, %v1541_v40  ;;  %v1852_v9 = vld [vmem:[#allocation7 + $0x398] sm:$0xff]  ;;  %v1549_v26 = vld [vmem:[#allocation7 + $0x160] sm:$0xff] }
 0x201   : > { %2731 = vmatpush1.bf16.msra.mxu1 %v2730_v47  ;;  %1391 = vmatprep.mubr.f32.mxu1 %v3350_v0  ;;  %v1754_v47 = vld [vmem:[#allocation7 + $0x2f0] sm:$0xff]  ;;  %v1638_v40 = vld [vmem:[#allocation7 + $0x1b8] sm:$0xff] }
 0x202   : > { %2733 = vmatprep.subr.bf16.mxu1 %v2732_v48  ;;  %v1755_v48 = vld [vmem:[#allocation7 + $0x2f8] sm:$0xff] }
 0x203   : > { %v2890_v50 = vpack.c.bf16 %v1755_v48, %v1754_v47  ;;  %v1543_v47 = vld [vmem:[#allocation7 + $0x130] sm:$0xff]  ;;  %v1544_v48 = vld [vmem:[#allocation7 + $0x138] sm:$0xff] }
 0x205   : > { %2735 = vmatpush1.bf16.msra.mxu1 %v2734_v55  ;;  %v3708_v55 = vrot.slane %v1408_v52, %v1412_v51  ;;  %v2806_v51 = vpack.c.bf16 %v1544_v48, %v1543_v47  ;;  %v1640_v47 = vld [vmem:[#allocation7 + $0x1c8] sm:$0xff] }
 0x206   : > { %2737 = vmatprep.subr.bf16.mxu1 %v2736_v56  ;;  %v1417_v56 = vrot.slane %v1408_v52, %v1416_v54  ;;  %v1847_v52 = vld [vmem:[#allocation7 + $0x370] sm:$0xff]  ;;  %v1848_v54 = vld [vmem:[#allocation7 + $0x378] sm:$0xff] }
 0x209   : > { %2739 = vmatpush1.bf16.msra.mxu1 %v2738_v2  ;;  %v1530_v2 = vld [vmem:[#allocation7 + $0xc8] sm:$0xff] }
 0x20a   : > { %2741 = vmatprep.subr.bf16.mxu1 %v2740_v3  ;;  %v2785_v7 = vpack.c.bf16 %v1530_v2, %v1529_v63  ;;  %v1849_v63 = vld [vmem:[#allocation7 + $0x380] sm:$0xff]  ;;  %v1850_v2 = vld [vmem:[#allocation7 + $0x388] sm:$0xff] }
 0x20d   : > { %2743 = vmatpush1.bf16.msra.mxu1 %v2742_v8  ;;  %v1833_v8 = vld [vmem:[#allocation7 + $0x300] sm:$0xff] }
 0x20e   : > { %2745 = vmatprep.subr.bf16.mxu1 %v2744_v36  ;;  %v2893_v11 = vpack.c.bf16 %v1834_v1, %v1833_v8  ;;  %v2917_v8 = vpack.c.bf16 %v1850_v2, %v1849_v63  ;;  %v1943_v63 = vld [vmem:[#allocation7 + $0x418] sm:$0xff]  ;;  %v1643_v2 = vld [vmem:[#allocation7 + $0x1e0] sm:$0xff] }
 0x211   : > { %2747 = vmatpush1.bf16.msra.mxu1 %v2746_v27 }
 0x212   : > { %2856 = vmatprep.subr.bf16.mxu1 %v3351_v58 }
 0x214   : > { %2470 = vmatmul.mubr.msk.f32.vlgmr.msra.gmra.mrb[0].mxu1 %vm1112_vm6, %v3674_v15  ;;  %v2866_v15 = vpack.c.bf16 %v1739_v20, %v1738_v19  ;;  %v1837_v20 = vld [vmem:[#allocation7 + $0x320] sm:$0xff] }
 0x215   : > { %1397 = vmatprep.mubr.f32.mxu1 %v3350_v0  ;;  %2858 = vmatpush1.bf16.msra.mxu1 %v2857_v59 }
 0x216   : > { %2859 = vmatprep.subr.bf16.mxu1 %v3351_v58 }
 0x218   : > { %2471 = vmatmul.mubr.msk.f32.gmra.mrb[2].mxu1 %vm1112_vm6, %v1295_v18  ;;  %v1534_v18 = vld [vmem:[#allocation7 + $0xe8] sm:$0xff] }
 0x219   : > { %2861 = vmatpush1.bf16.msra.mxu1 %v2860_v14  ;;  %v1835_v14 = vld [vmem:[#allocation7 + $0x310] sm:$0xff]  ;;  %v2791_v19 = vpack.c.bf16 %v1534_v18, %v1533_v17 }
 0x21a   : > { %2862 = vmatprep.subr.bf16.mxu1 %v3351_v58  ;;  %v1855_v18 = vld [vmem:[#allocation7 + $0x3b0] sm:$0xff] }
 0x21d   : > { %2864 = vmatpush1.bf16.msra.mxu1 %v2863_v44  ;;  %v2896_v44 = vpack.c.bf16 %v1836_v16, %v1835_v14  ;;  %v1552_v14 = vld [vmem:[#allocation7 + $0x178] sm:$0xff] }
 0x21e   : > { %2865 = vmatprep.subr.bf16.mxu1 %v3351_v58 }
 0x221   : > { %2867 = vmatpush1.bf16.msra.mxu1 %v2866_v15  ;;  %v1838_v15 = vld [vmem:[#allocation7 + $0x328] sm:$0xff] }
 0x222   : > { %2868 = vmatprep.subr.bf16.mxu1 %v3351_v58 }
 0x225   : > { %2870 = vmatpush1.bf16.msra.mxu1 %v2869_v23  ;;  %v2899_v23 = vpack.c.bf16 %v1838_v15, %v1837_v20  ;;  %v1632_v20 = vld [vmem:[#allocation7 + $0x188] sm:$0xff] }
 0x226   : > { %2871 = vmatprep.subr.bf16.mxu1 %v3351_v58 }
 0x229   : > { %2873 = vmatpush1.bf16.msra.mxu1 %v2872_v25  ;;  %v1840_v25 = vld [vmem:[#allocation7 + $0x338] sm:$0xff] }
 0x22a   : > { %2874 = vmatprep.subr.bf16.mxu1 %v3351_v58 }
 0x22d   : > { %2876 = vmatpush1.bf16.msra.mxu1 %v2875_v30  ;;  %v2902_v30 = vpack.c.bf16 %v1840_v25, %v1839_v43  ;;  %v1633_v25 = vld [vmem:[#allocation7 + $0x190] sm:$0xff] }
 0x22e   : > { %2877 = vmatprep.subr.bf16.mxu1 %v3351_v58 }
 0x231   : > { %2879 = vmatpush1.bf16.msra.mxu1 %v2878_v33  ;;  %v1842_v33 = vld [vmem:[#allocation7 + $0x348] sm:$0xff] }
 0x232   : > { %2880 = vmatprep.subr.bf16.mxu1 %v3351_v58 }
 0x235   : > { %2882 = vmatpush1.bf16.msra.mxu1 %v2881_v35  ;;  %v2905_v35 = vpack.c.bf16 %v1842_v33, %v1841_v32  ;;  %v1935_v32 = vld [vmem:[#allocation7 + $0x3d8] sm:$0xff] }
 0x236   : > { %2883 = vmatprep.subr.bf16.mxu1 %v3351_v58 }
 0x239   : > { %2885 = vmatpush1.bf16.msra.mxu1 %v2884_v39  ;;  %v1844_v39 = vld [vmem:[#allocation7 + $0x358] sm:$0xff] }
 0x23a   : > { %2886 = vmatprep.subr.bf16.mxu1 %v3351_v58 }
 0x23d   : > { %2888 = vmatpush1.bf16.msra.mxu1 %v2887_v41  ;;  %v2908_v41 = vpack.c.bf16 %v1844_v39, %v1843_v38  ;;  %v1937_v38 = vld [vmem:[#allocation7 + $0x3e8] sm:$0xff]  ;;  %v1637_v39 = vld [vmem:[#allocation7 + $0x1b0] sm:$0xff] }
 0x23e   : > { %2889 = vmatprep.subr.bf16.mxu1 %v3351_v58 }
 0x241   : > { %2891 = vmatpush1.bf16.msra.mxu1 %v2890_v50  ;;  %v2911_v50 = vpack.c.bf16 %v1846_v46, %v1845_v45  ;;  %v1939_v45 = vld [vmem:[#allocation7 + $0x3f8] sm:$0xff]  ;;  %v1639_v46 = vld [vmem:[#allocation7 + $0x1c0] sm:$0xff] }
 0x242   : > { %2892 = vmatprep.subr.bf16.mxu1 %v3351_v58 }
 0x2e7   : > { %v1393_v57 = vpop.f32.mrb[0].mxu1 }
 0x2e8   : > { %v1420_v60 = vadd.f32 %v3708_v55, %v1393_v57  ;;  %v1395_v61 = vpop.f32.mrb[1].mxu1  ;;  %v1546_v57 = vld [vmem:[#allocation7 + $0x148] sm:$0xff] }
 0x2e9   : > { %v1421_v3 = vadd.f32 %v1417_v56, %v1395_v61 }
 0x2ea   : > { %v3711_v4 = vmax.f32 %v1420_v60, 0.0  ;;  %v2914_v60 = vpack.c.bf16 %v1848_v54, %v1847_v52  ;;  %v1941_v52 = vld [vmem:[#allocation7 + $0x408] sm:$0xff]  ;;  %v1641_v54 = vld [vmem:[#allocation7 + $0x1d0] sm:$0xff] }
 0x2eb   : > { %v3713_v5 = vmax.f32 %v1421_v3, 0.0  ;;  %v3715_v6 = vpop.f32.mrb[2].mxu1  ;;  %v1547_v3 = vld [vmem:[#allocation7 + $0x150] sm:$0xff] }
 0x2ec   : > { %v1401_v36 = vpop.f32.mrb[3].mxu1  ;;  %v1756_v59 = vrot.slane %v3711_v4, 6  ;;  %v1422_v21 = vadd.f32 %v3708_v55, %v3715_v6  ;;  %v1554_v43 = vrot.slane %v3711_v4, 2  ;;  %v2824_v55 = vpack.c.bf16 %v1634_v28, %v1633_v25  ;;  %v1934_v6 = vld [vmem:[#allocation7 + $0x3d0] sm:$0xff]  ;;  %v1952_v28 = vld [vmem:[#allocation7 + $0x460] sm:$0xff] }
 0x2ed   : > { %v1423_v27 = vadd.f32 %v1417_v56, %v1401_v36  ;;  %2472 = vmatprep.mubr.msk.f32.mxu0 %vm1453_vm8, %v3713_v5  ;;  %v1555_v10 = vrot.slane %v3713_v5, 2  ;;  %v1757_v49 = vrot.slane %v3713_v5, 6  ;;  %v1545_v56 = vld [vmem:[#allocation7 + $0x140] sm:$0xff]  ;;  %v1851_v36 = vld [vmem:[#allocation7 + $0x390] sm:$0xff]  ;;  %v1656_v29 = vrot.slane %v3713_v5, 4 }
 0x2ee   : > { %1522 = vmatmul.mubr.f32.vlgmr.msra.gmra.mrb[6].mxu0 %v3711_v4  ;;  %v2809_v61 = vpack.c.bf16 %v1546_v57, %v1545_v56  ;;  %v2932_v5 = vpack.c.bf16 %v1935_v32, %v1934_v6  ;;  %v1642_v56 = vld [vmem:[#allocation7 + $0x1d8] sm:$0xff] }
 0x2ef   : > { %v3723_v12 = vmax.f32 %v1423_v27, 0.0  ;;  %2786 = vmatpush1.bf16.msra.mxu0 %v2785_v7  ;;  %2473 = vmatprep.mubr.msk.f32.mxu0 %vm1453_vm8, %v1555_v10  ;;  %v1548_v7 = vld [vmem:[#allocation7 + $0x158] sm:$0xff]  ;;  %v1550_v27 = vld [vmem:[#allocation7 + $0x168] sm:$0xff]  ;;  %v2920_v10 = vpack.c.bf16 %v1852_v9, %v1851_v36  ;;  %v1645_v9 = vld [vmem:[#allocation7 + $0x1f0] sm:$0xff] }
 0x2f0   : > { %2475 = vmatprep.mubr.msk.f32.mxu1 %vm1453_vm8, %v1757_v49  ;;  %2787 = vmatprep.subr.bf16.mxu0 %v3351_v58  ;;  %v2812_v1 = vpack.c.bf16 %v1548_v7, %v1547_v3  ;;  %v2815_v49 = vpack.c.bf16 %v1550_v27, %v1549_v26  ;;  %v1644_v3 = vld [vmem:[#allocation7 + $0x1e8] sm:$0xff]  ;;  %v1646_v26 = vld [vmem:[#allocation7 + $0x1f8] sm:$0xff] }
 0x2f1   : > { %1826 = vmatmul.mubr.f32.vlgmr.msra.gmra.mrb[4].mxu1 %v1756_v59  ;;  %v1854_v59 = vld [vmem:[#allocation7 + $0x3a8] sm:$0xff]  ;;  %v1958_v33 = vrot.slane %v3723_v12, 2 }
 0x2f2   : > { %2894 = vmatpush1.bf16.msra.mxu1 %v2893_v11  ;;  %2476 = vmatprep.mubr.msk.f32.mxu1 %vm1453_vm8, %v3723_v12  ;;  %v1853_v11 = vld [vmem:[#allocation7 + $0x3a0] sm:$0xff]  ;;  %v1945_v36 = vld [vmem:[#allocation7 + $0x428] sm:$0xff] }
 0x2f3   : > { %2789 = vmatpush1.bf16.msra.mxu0 %v2788_v13  ;;  %2895 = vmatprep.subr.bf16.mxu1 %v3351_v58  ;;  %v1551_v13 = vld [vmem:[#allocation7 + $0x170] sm:$0xff]  ;;  %v2923_v16 = vpack.c.bf16 %v1854_v59, %v1853_v11  ;;  %v1947_v11 = vld [vmem:[#allocation7 + $0x438] sm:$0xff]  ;;  %v1647_v59 = vld [vmem:[#allocation7 + $0x200] sm:$0xff] }
 0x2f4   : > { %2790 = vmatprep.subr.bf16.mxu0 %v3351_v58  ;;  %v2818_v17 = vpack.c.bf16 %v1552_v14, %v1551_v13  ;;  %v1648_v13 = vld [vmem:[#allocation7 + $0x208] sm:$0xff] }
 0x2f6   : > { %2897 = vmatpush1.bf16.msra.mxu1 %v2896_v44  ;;  %v1856_v44 = vld [vmem:[#allocation7 + $0x3b8] sm:$0xff] }
 0x2f7   : > { %2792 = vmatpush1.bf16.msra.mxu0 %v2791_v19  ;;  %2898 = vmatprep.subr.bf16.mxu1 %v3351_v58  ;;  %v1631_v19 = vld [vmem:[#allocation7 + $0x180] sm:$0xff]  ;;  %v2926_v15 = vpack.c.bf16 %v1856_v44, %v1855_v18  ;;  %v1949_v18 = vld [vmem:[#allocation7 + $0x448] sm:$0xff]  ;;  %v1649_v44 = vld [vmem:[#allocation7 + $0x210] sm:$0xff] }
 0x2f8   : > { %2793 = vmatprep.subr.bf16.mxu0 %v3351_v58  ;;  %v2821_v22 = vpack.c.bf16 %v1632_v20, %v1631_v19  ;;  %v1650_v19 = vld [vmem:[#allocation7 + $0x218] sm:$0xff] }
 0x2fa   : > { %2900 = vmatpush1.bf16.msra.mxu1 %v2899_v23  ;;  %v1932_v23 = vld [vmem:[#allocation7 + $0x3c0] sm:$0xff] }
 0x2fb   : > { %2795 = vmatpush1.bf16.msra.mxu0 %v2794_v24  ;;  %2901 = vmatprep.subr.bf16.mxu1 %v3351_v58  ;;  %v1933_v24 = vld [vmem:[#allocation7 + $0x3c8] sm:$0xff] }
 0x2fc   : > { %2796 = vmatprep.subr.bf16.mxu0 %v3351_v58 }
 0x2fe   : > { %2903 = vmatpush1.bf16.msra.mxu1 %v2902_v30  ;;  %v2929_v30 = vpack.c.bf16 %v1933_v24, %v1932_v23  ;;  %v1651_v23 = vld [vmem:[#allocation7 + $0x220] sm:$0xff]  ;;  %v1652_v24 = vld [vmem:[#allocation7 + $0x228] sm:$0xff] }
 0x2ff   : > { %2798 = vmatpush1.bf16.msra.mxu0 %v2797_v31  ;;  %2904 = vmatprep.subr.bf16.mxu1 %v3351_v58  ;;  %v3756_v31 = vmax.f32 %v1422_v21, 0.0  ;;  %v1950_v21 = vld [vmem:[#allocation7 + $0x450] sm:$0xff]  ;;  %v2851_v25 = vpack.c.bf16 %v1652_v24, %v1651_v23  ;;  %v2139_v23 = vld [vmem:[#allocation7 + $0x560] sm:$0xff]  ;;  %v2140_v24 = vld [vmem:[#allocation7 + $0x568] sm:$0xff] }
 0x300   : > { %2799 = vmatprep.subr.bf16.mxu0 %v3351_v58 }
 0x302   : > { %2906 = vmatpush1.bf16.msra.mxu1 %v2905_v35  ;;  %v2827_v35 = vpack.c.bf16 %v1636_v34, %v1635_v53  ;;  %v1955_v53 = vld [vmem:[#allocation7 + $0x478] sm:$0xff] }
 0x303   : > { %2801 = vmatpush1.bf16.msra.mxu0 %v2800_v37  ;;  %2907 = vmatprep.subr.bf16.mxu1 %v3351_v58  ;;  %v1936_v37 = vld [vmem:[#allocation7 + $0x3e0] sm:$0xff] }
 0x304   : > { %2802 = vmatprep.subr.bf16.mxu0 %v3351_v58  ;;  %v2935_v62 = vpack.c.bf16 %v1937_v38, %v1936_v37  ;;  %v1655_v37 = vrot.slane %v3711_v4, 4  ;;  %v2038_v4 = vld [vmem:[#allocation7 + $0x4a0] sm:$0xff] }
 0x306   : > { %2909 = vmatpush1.bf16.msra.mxu1 %v2908_v41  ;;  %v2830_v41 = vpack.c.bf16 %v1638_v40, %v1637_v39  ;;  %v1957_v39 = vrot.slane %v3756_v31, 2  ;;  %v2036_v40 = vld [vmem:[#allocation7 + $0x490] sm:$0xff] }
 0x307   : > { %2804 = vmatpush1.bf16.msra.mxu0 %v2803_v42  ;;  %2910 = vmatprep.subr.bf16.mxu1 %v3351_v58  ;;  %v1938_v42 = vld [vmem:[#allocation7 + $0x3f0] sm:$0xff] }
 0x308   : > { %2805 = vmatprep.subr.bf16.mxu0 %v3351_v58  ;;  %v2938_v48 = vpack.c.bf16 %v1939_v45, %v1938_v42  ;;  %v2039_v45 = vld [vmem:[#allocation7 + $0x4a8] sm:$0xff] }
 0x30a   : > { %2912 = vmatpush1.bf16.msra.mxu1 %v2911_v50  ;;  %v2833_v50 = vpack.c.bf16 %v1640_v47, %v1639_v46  ;;  %v2971_v46 = vpack.c.bf16 %v2039_v45, %v2038_v4  ;;  %v2040_v47 = vld [vmem:[#allocation7 + $0x4b0] sm:$0xff] }
 0x30b   : > { %2807 = vmatpush1.bf16.msra.mxu0 %v2806_v51  ;;  %2913 = vmatprep.subr.bf16.mxu1 %v3351_v58  ;;  %v1940_v51 = vld [vmem:[#allocation7 + $0x400] sm:$0xff]  ;;  %v2236_v45 = vld [vmem:[%s3936_s7] sm:$0xff] }
 0x30c   : > { %2808 = vmatprep.subr.bf16.mxu0 %v3351_v58  ;;  %v2941_v57 = vpack.c.bf16 %v1941_v52, %v1940_v51  ;;  %v2042_v51 = vld [vmem:[#allocation7 + $0x4c0] sm:$0xff]  ;;  %v2043_v52 = vld [vmem:[#allocation7 + $0x4c8] sm:$0xff] }
 0x30e   : > { %2915 = vmatpush1.bf16.msra.mxu1 %v2914_v60  ;;  %v2836_v60 = vpack.c.bf16 %v1642_v56, %v1641_v54  ;;  %v2977_v54 = vpack.c.bf16 %v2043_v52, %v2042_v51  ;;  %v2044_v56 = vld [vmem:[#allocation7 + $0x4d0] sm:$0xff]  ;;  %v2239_v52 = vld [vmem:[%s3936_s7 + $0x18] sm:$0xff] }
 0x30f   : > { %2810 = vmatpush1.bf16.msra.mxu0 %v2809_v61  ;;  %2916 = vmatprep.subr.bf16.mxu1 %v3351_v58  ;;  %v1942_v61 = vld [vmem:[#allocation7 + $0x410] sm:$0xff] }
 0x310   : > { %2811 = vmatprep.subr.bf16.mxu0 %v3351_v58  ;;  %v2944_v7 = vpack.c.bf16 %v1943_v63, %v1942_v61  ;;  %v2046_v61 = vld [vmem:[#allocation7 + $0x4e0] sm:$0xff]  ;;  %v2047_v63 = vld [vmem:[#allocation7 + $0x4e8] sm:$0xff] }
 0x312   : > { %2918 = vmatpush1.bf16.msra.mxu1 %v2917_v8  ;;  %v2839_v8 = vpack.c.bf16 %v1644_v3, %v1643_v2  ;;  %v2983_v2 = vpack.c.bf16 %v2047_v63, %v2046_v61  ;;  %v2048_v3 = vld [vmem:[#allocation7 + $0x4f0] sm:$0xff]  ;;  %v2158_v63 = vld [vmem:[#allocation7 + $0x5f8] sm:$0xff] }
 0x313   : > { %2813 = vmatpush1.bf16.msra.mxu0 %v2812_v1  ;;  %2919 = vmatprep.subr.bf16.mxu1 %v3351_v58  ;;  %v1944_v1 = vld [vmem:[#allocation7 + $0x420] sm:$0xff]  ;;  %v2157_v61 = vld [vmem:[#allocation7 + $0x5f0] sm:$0xff] }
 0x314   : > { %2814 = vmatprep.subr.bf16.mxu0 %v3351_v58  ;;  %v2947_v27 = vpack.c.bf16 %v1945_v36, %v1944_v1  ;;  %v2050_v1 = vld [vmem:[#allocation7 + $0x500] sm:$0xff]  ;;  %v2051_v36 = vld [vmem:[#allocation7 + $0x508] sm:$0xff] }
 0x316   : > { %2921 = vmatpush1.bf16.msra.mxu1 %v2920_v10  ;;  %v2842_v10 = vpack.c.bf16 %v1646_v26, %v1645_v9  ;;  %v2989_v9 = vpack.c.bf16 %v2051_v36, %v2050_v1  ;;  %v2052_v26 = vld [vmem:[#allocation7 + $0x510] sm:$0xff] }
 0x317   : > { %2816 = vmatpush1.bf16.msra.mxu0 %v2815_v49  ;;  %2922 = vmatprep.subr.bf16.mxu1 %v3351_v58  ;;  %v1946_v49 = vld [vmem:[#allocation7 + $0x430] sm:$0xff] }
 0x318   : > { %2817 = vmatprep.subr.bf16.mxu0 %v3351_v58  ;;  %v2950_v14 = vpack.c.bf16 %v1947_v11, %v1946_v49  ;;  %v2054_v49 = vld [vmem:[#allocation7 + $0x520] sm:$0xff]  ;;  %v2055_v11 = vld [vmem:[#allocation7 + $0x528] sm:$0xff]  ;;  %v2244_v36 = vld [vmem:[%s3936_s7 + $0x40] sm:$0xff] }
 0x31a   : > { %2924 = vmatpush1.bf16.msra.mxu1 %v2923_v16  ;;  %v2845_v16 = vpack.c.bf16 %v1648_v13, %v1647_v59  ;;  %v2995_v59 = vpack.c.bf16 %v2055_v11, %v2054_v49  ;;  %v2056_v13 = vld [vmem:[#allocation7 + $0x530] sm:$0xff]  ;;  %v2247_v49 = vld [vmem:[%s3936_s7 + $0x58] sm:$0xff] }
 0x31b   : > { %2819 = vmatpush1.bf16.msra.mxu0 %v2818_v17  ;;  %2925 = vmatprep.subr.bf16.mxu1 %v3351_v58  ;;  %v1948_v17 = vld [vmem:[#allocation7 + $0x440] sm:$0xff] }
 0x31c   : > { %2820 = vmatprep.subr.bf16.mxu0 %v3351_v58  ;;  %v2953_v20 = vpack.c.bf16 %v1949_v18, %v1948_v17  ;;  %v2135_v17 = vld [vmem:[#allocation7 + $0x540] sm:$0xff]  ;;  %v2136_v18 = vld [vmem:[#allocation7 + $0x548] sm:$0xff] }
 0x31e   : > { %2927 = vmatpush1.bf16.msra.mxu1 %v2926_v15  ;;  %1624 = vmatmul.mubr.f32.vlgmr.msra.gmra.mrb[6].mxu0 %v1554_v43  ;;  %v2848_v15 = vpack.c.bf16 %v1650_v19, %v1649_v44  ;;  %v3001_v44 = vpack.c.bf16 %v2136_v18, %v2135_v17  ;;  %v2058_v19 = vrot.slane %v3756_v31, 4 }
 0x31f   : > { %2822 = vmatpush1.bf16.msra.mxu0 %v2821_v22  ;;  %2474 = vmatprep.mubr.msk.f32.mxu0 %vm1453_vm8, %v1656_v29  ;;  %v1951_v22 = vld [vmem:[#allocation7 + $0x458] sm:$0xff]  ;;  %v1953_v29 = vld [vmem:[#allocation7 + $0x468] sm:$0xff] }
 0x320   : > { %2928 = vmatprep.subr.bf16.mxu1 %v3351_v58  ;;  %2823 = vmatprep.subr.bf16.mxu0 %v3351_v58  ;;  %v2956_v43 = vpack.c.bf16 %v1951_v22, %v1950_v21  ;;  %v2959_v6 = vpack.c.bf16 %v1953_v29, %v1952_v28  ;;  %v2160_v21 = vrot.slane %v3723_v12, 6  ;;  %v2142_v28 = vld [vmem:[#allocation7 + $0x578] sm:$0xff] }
 0x321   : > { %1925 = vmatmul.mubr.f32.vlgmr.msra.gmra.mrb[4].mxu1 %v3756_v31 }
 0x322   : > { %2930 = vmatpush1.bf16.msra.mxu1 %v2929_v30  ;;  %2477 = vmatprep.mubr.msk.f32.mxu1 %vm1453_vm8, %v1958_v33  ;;  %v1653_v30 = vld [vmem:[#allocation7 + $0x230] sm:$0xff] }
 0x323   : > { %2825 = vmatpush1.bf16.msra.mxu0 %v2824_v55  ;;  %2931 = vmatprep.subr.bf16.mxu1 %v3351_v58  ;;  %v1654_v55 = vld [vmem:[#allocation7 + $0x238] sm:$0xff]  ;;  %v1954_v33 = vld [vmem:[#allocation7 + $0x470] sm:$0xff] }
 0x324   : > { %2826 = vmatprep.subr.bf16.mxu0 %v3351_v58  ;;  %v2854_v32 = vpack.c.bf16 %v1654_v55, %v1653_v30  ;;  %v2962_v34 = vpack.c.bf16 %v1955_v53, %v1954_v33  ;;  %v2144_v30 = vld [vmem:[#allocation7 + $0x588] sm:$0xff]  ;;  %v2147_v53 = vld [vmem:[#allocation7 + $0x5a0] sm:$0xff] }
 0x326   : > { %2933 = vmatpush1.bf16.msra.mxu1 %v2932_v5  ;;  %v2034_v5 = vld [vmem:[#allocation7 + $0x480] sm:$0xff] }
 0x327   : > { %2828 = vmatpush1.bf16.msra.mxu0 %v2827_v35  ;;  %2934 = vmatprep.subr.bf16.mxu1 %v3351_v58  ;;  %v2035_v35 = vld [vmem:[#allocation7 + $0x488] sm:$0xff] }
 0x328   : > { %2829 = vmatprep.subr.bf16.mxu0 %v3351_v58  ;;  %v2965_v38 = vpack.c.bf16 %v2035_v35, %v2034_v5  ;;  %v2149_v35 = vld [vmem:[#allocation7 + $0x5b0] sm:$0xff] }
 0x32a   : > { %2936 = vmatpush1.bf16.msra.mxu1 %v2935_v62  ;;  %v2037_v62 = vld [vmem:[#allocation7 + $0x498] sm:$0xff] }
 0x32b   : > { %2831 = vmatpush1.bf16.msra.mxu0 %v2830_v41  ;;  %2937 = vmatprep.subr.bf16.mxu1 %v3351_v58  ;;  %v2059_v41 = vrot.slane %v3723_v12, 4  ;;  %v2968_v42 = vpack.c.bf16 %v2037_v62, %v2036_v40  ;;  %v2143_v12 = vld [vmem:[#allocation7 + $0x580] sm:$0xff]  ;;  %v2152_v40 = vld [vmem:[#allocation7 + $0x5c8] sm:$0xff] }
 0x32c   : > { %2832 = vmatprep.subr.bf16.mxu0 %v3351_v58  ;;  %v3013_v55 = vpack.c.bf16 %v2144_v30, %v2143_v12 }
 0x32e   : > { %2939 = vmatpush1.bf16.msra.mxu1 %v2938_v48  ;;  %v2041_v48 = vld [vmem:[#allocation7 + $0x4b8] sm:$0xff] }
 0x32f   : > { %2834 = vmatpush1.bf16.msra.mxu0 %v2833_v50  ;;  %2940 = vmatprep.subr.bf16.mxu1 %v3351_v58  ;;  %v2974_v50 = vpack.c.bf16 %v2041_v48, %v2040_v47  ;;  %v2238_v47 = vld [vmem:[%s3936_s7 + $0x10] sm:$0xff] }
 0x330   : > { %2835 = vmatprep.subr.bf16.mxu0 %v3351_v58  ;;  %v2155_v48 = vld [vmem:[#allocation7 + $0x5e0] sm:$0xff] }
 0x332   : > { %2942 = vmatpush1.bf16.msra.mxu1 %v2941_v57  ;;  %v2045_v57 = vld [vmem:[#allocation7 + $0x4d8] sm:$0xff] }
 0x333   : > { %2837 = vmatpush1.bf16.msra.mxu0 %v2836_v60  ;;  %2943 = vmatprep.subr.bf16.mxu1 %v3351_v58  ;;  %v2980_v60 = vpack.c.bf16 %v2045_v57, %v2044_v56  ;;  %v2240_v57 = vld [vmem:[%s3936_s7 + $0x20] sm:$0xff] }
 0x334   : > { %2838 = vmatprep.subr.bf16.mxu0 %v3351_v58 }
 0x336   : > { %2945 = vmatpush1.bf16.msra.mxu1 %v2944_v7  ;;  %v2049_v7 = vld [vmem:[#allocation7 + $0x4f8] sm:$0xff] }
 0x337   : > { %2840 = vmatpush1.bf16.msra.mxu0 %v2839_v8  ;;  %2946 = vmatprep.subr.bf16.mxu1 %v3351_v58  ;;  %v2986_v8 = vpack.c.bf16 %v2049_v7, %v2048_v3  ;;  %v3034_v3 = vpack.c.bf16 %v2158_v63, %v2157_v61  ;;  %v2242_v7 = vld [vmem:[%s3936_s7 + $0x30] sm:$0xff] }
 0x338   : > { %2841 = vmatprep.subr.bf16.mxu0 %v3351_v58 }
 0x33a   : > { %2948 = vmatpush1.bf16.msra.mxu1 %v2947_v27  ;;  %v2053_v27 = vld [vmem:[#allocation7 + $0x518] sm:$0xff] }
 0x33b   : > { %2843 = vmatpush1.bf16.msra.mxu0 %v2842_v10  ;;  %2949 = vmatprep.subr.bf16.mxu1 %v3351_v58  ;;  %v2992_v10 = vpack.c.bf16 %v2053_v27, %v2052_v26  ;;  %v2159_v26 = vrot.slane %v3756_v31, 6  ;;  %v2248_v31 = vld [vmem:[%s3936_s7 + $0x60] sm:$0xff] }
 0x33c   : > { %2844 = vmatprep.subr.bf16.mxu0 %v3351_v58 }
 0x33e   : > { %2951 = vmatpush1.bf16.msra.mxu1 %v2950_v14  ;;  %v2057_v14 = vld [vmem:[#allocation7 + $0x538] sm:$0xff] }
 0x33f   : > { %2846 = vmatpush1.bf16.msra.mxu0 %v2845_v16  ;;  %2952 = vmatprep.subr.bf16.mxu1 %v3351_v58  ;;  %v2998_v16 = vpack.c.bf16 %v2057_v14, %v2056_v13  ;;  %v2250_v14 = vld [vmem:[%s3936_s7 + $0x70] sm:$0xff] }
 0x340   : > { %2847 = vmatprep.subr.bf16.mxu0 %v3351_v58 }
 0x342   : > { %2954 = vmatpush1.bf16.msra.mxu1 %v2953_v20  ;;  %v2137_v20 = vld [vmem:[#allocation7 + $0x550] sm:$0xff] }
 0x343   : > { %2849 = vmatpush1.bf16.msra.mxu0 %v2848_v15  ;;  %2955 = vmatprep.subr.bf16.mxu1 %v3351_v58  ;;  %v2138_v15 = vld [vmem:[#allocation7 + $0x558] sm:$0xff] }
 0x344   : > { %2850 = vmatprep.subr.bf16.mxu0 %v3351_v58  ;;  %v3004_v22 = vpack.c.bf16 %v2138_v15, %v2137_v20 }
 0x346   : > { %2957 = vmatpush1.bf16.msra.mxu1 %v2956_v43  ;;  %v3007_v43 = vpack.c.bf16 %v2140_v24, %v2139_v23  ;;  %v2252_v23 = vld [vmem:[%s3937_s8] sm:$0x1] }
 0x347   : > { %2852 = vmatpush1.bf16.msra.mxu0 %v2851_v25  ;;  %2958 = vmatprep.subr.bf16.mxu1 %v3351_v58  ;;  %v2141_v25 = vld [vmem:[#allocation7 + $0x570] sm:$0xff] }
 0x348   : > { %2853 = vmatprep.subr.bf16.mxu0 %v3351_v58  ;;  %v3010_v29 = vpack.c.bf16 %v2142_v28, %v2141_v25 }
 0x34a   : > { %2960 = vmatpush1.bf16.msra.mxu1 %v2959_v6  ;;  %v2145_v6 = vld [vmem:[#allocation7 + $0x590] sm:$0xff] }
 0x34b   : > { %2855 = vmatpush1.bf16.msra.mxu0 %v2854_v32  ;;  %2961 = vmatprep.subr.bf16.mxu1 %v3351_v58  ;;  %v2146_v32 = vld [vmem:[#allocation7 + $0x598] sm:$0xff] }
 0x34c   : > { %3036 = vmatprep.subr.bf16.mxu0 %v3351_v58  ;;  %v3016_v33 = vpack.c.bf16 %v2146_v32, %v2145_v6 }
 0x34e   : > { %2963 = vmatpush1.bf16.msra.mxu1 %v2962_v34  ;;  %1725 = vmatmul.mubr.f32.vlgmr.msra.gmra.mrb[6].mxu0 %v1655_v37  ;;  %v2148_v34 = vld [vmem:[#allocation7 + $0x5a8] sm:$0xff]  ;;  %v2150_v37 = vld [vmem:[#allocation7 + $0x5b8] sm:$0xff] }
 0x34f   : > { %2964 = vmatprep.subr.bf16.mxu1 %v3351_v58  ;;  %v3019_v5 = vpack.c.bf16 %v2148_v34, %v2147_v53  ;;  %2533 = vmatprep.mubr.msk.f32.mxu0 %vm3352_vm9, %v3350_v0 }
 0x351   : > { %2027 = vmatmul.mubr.f32.vlgmr.msra.gmra.mrb[4].mxu1 %v1957_v39  ;;  %v2151_v39 = vld [vmem:[#allocation7 + $0x5c0] sm:$0xff] }
 0x352   : > { %2966 = vmatpush1.bf16.msra.mxu1 %v2965_v38  ;;  %2478 = vmatprep.mubr.msk.f32.mxu1 %vm1453_vm8, %v2059_v41  ;;  %v3022_v38 = vpack.c.bf16 %v2150_v37, %v2149_v35  ;;  %v3025_v62 = vpack.c.bf16 %v2152_v40, %v2151_v39  ;;  %v2153_v41 = vld [vmem:[#allocation7 + $0x5d0] sm:$0xff] }
 0x353   : > { %2967 = vmatprep.subr.bf16.mxu1 %v3351_v58 }
 0x356   : > { %2969 = vmatpush1.bf16.msra.mxu1 %v2968_v42  ;;  %v2154_v42 = vld [vmem:[#allocation7 + $0x5d8] sm:$0xff] }
 0x357   : > { %2970 = vmatprep.subr.bf16.mxu1 %v3351_v58  ;;  %v3028_v4 = vpack.c.bf16 %v2154_v42, %v2153_v41 }
 0x35a   : > { %2972 = vmatpush1.bf16.msra.mxu1 %v2971_v46  ;;  %v2237_v46 = vld [vmem:[%s3936_s7 + $0x8] sm:$0xff] }
 0x35b   : > { %2973 = vmatprep.subr.bf16.mxu1 %v3351_v58  ;;  %v3037_v51 = vpack.c.bf16 %v2237_v46, %v2236_v45 }
 0x35d   : > { %3038 = vmatpush3.bf16.msra.mxu0 %v3037_v51 }
 0x35e   : > { %2975 = vmatpush1.bf16.msra.mxu1 %v2974_v50  ;;  %v2156_v50 = vld [vmem:[#allocation7 + $0x5e8] sm:$0xff]  ;;  %3039 = vmatprep.subr.bf16.mxu0 %v3351_v58 }
 0x35f   : > { %2976 = vmatprep.subr.bf16.mxu1 %v3351_v58  ;;  %v3031_v56 = vpack.c.bf16 %v2156_v50, %v2155_v48 }
 0x362   : > { %2978 = vmatpush1.bf16.msra.mxu1 %v2977_v54  ;;  %v3040_v54 = vpack.c.bf16 %v2239_v52, %v2238_v47 }
 0x363   : > { %2979 = vmatprep.subr.bf16.mxu1 %v3351_v58 }
 0x364   : > { %3041 = vmatpush3.bf16.msra.mxu0 %v3040_v54 }
 0x365   : > { %3042 = vmatprep.subr.bf16.mxu0 %v3351_v58 }
 0x366   : > { %2981 = vmatpush1.bf16.msra.mxu1 %v2980_v60  ;;  %v2241_v60 = vld [vmem:[%s3936_s7 + $0x28] sm:$0xff] }
 0x367   : > { %2982 = vmatprep.subr.bf16.mxu1 %v3351_v58 }
 0x36a   : > { %2984 = vmatpush1.bf16.msra.mxu1 %v2983_v2  ;;  %v3043_v2 = vpack.c.bf16 %v2241_v60, %v2240_v57 }
 0x36b   : > { %2985 = vmatprep.subr.bf16.mxu1 %v3351_v58 }
 0x36c   : > { %3044 = vmatpush3.bf16.msra.mxu0 %v3043_v2 }
 0x36d   : > { %3045 = vmatprep.subr.bf16.mxu0 %v3351_v58 }
 0x36e   : > { %2987 = vmatpush1.bf16.msra.mxu1 %v2986_v8  ;;  %v2243_v8 = vld [vmem:[%s3936_s7 + $0x38] sm:$0xff] }
 0x36f   : > { %2988 = vmatprep.subr.bf16.mxu1 %v3351_v58  ;;  %v3046_v1 = vpack.c.bf16 %v2243_v8, %v2242_v7 }
 0x371   : > { %3047 = vmatpush3.bf16.msra.mxu0 %v3046_v1 }
 0x372   : > { %2990 = vmatpush1.bf16.msra.mxu1 %v2989_v9  ;;  %v2245_v9 = vld [vmem:[%s3936_s7 + $0x48] sm:$0xff]  ;;  %3048 = vmatprep.subr.bf16.mxu0 %v3351_v58 }
 0x373   : > { %2991 = vmatprep.subr.bf16.mxu1 %v3351_v58  ;;  %v3049_v27 = vpack.c.bf16 %v2245_v9, %v2244_v36 }
 0x375   : > { %3050 = vmatpush3.bf16.msra.mxu0 %v3049_v27 }
 0x376   : > { %2993 = vmatpush1.bf16.msra.mxu1 %v2992_v10  ;;  %v2246_v10 = vld [vmem:[%s3936_s7 + $0x50] sm:$0xff]  ;;  %3051 = vmatprep.subr.bf16.mxu0 %v3351_v58 }
 0x377   : > { %2994 = vmatprep.subr.bf16.mxu1 %v3351_v58  ;;  %v3052_v11 = vpack.c.bf16 %v2247_v49, %v2246_v10 }
 0x379   : > { %3053 = vmatpush3.bf16.msra.mxu0 %v3052_v11 }
 0x37a   : > { %2996 = vmatpush1.bf16.msra.mxu1 %v2995_v59  ;;  %v2249_v59 = vld [vmem:[%s3936_s7 + $0x68] sm:$0xff]  ;;  %3054 = vmatprep.subr.bf16.mxu0 %v3351_v58 }
 0x37b   : > { %2997 = vmatprep.subr.bf16.mxu1 %v3351_v58  ;;  %v3055_v13 = vpack.c.bf16 %v2249_v59, %v2248_v31 }
 0x37d   : > { %3056 = vmatpush3.bf16.msra.mxu0 %v3055_v13 }
 0x37e   : > { %2999 = vmatpush1.bf16.msra.mxu1 %v2998_v16  ;;  %3057 = vmatprep.subr.bf16.mxu0 %v3351_v58  ;;  %v2251_v16 = vld [vmem:[%s3936_s7 + $0x78] sm:$0xff] }
 0x37f   : > { %3000 = vmatprep.subr.bf16.mxu1 %v3351_v58  ;;  %v3058_v17 = vpack.c.bf16 %v2251_v16, %v2250_v14 }
 0x381   : > { %2128 = vmatmul.mubr.f32.vlgmr.msra.gmra.mrb[4].mxu1 %v2058_v19  ;;  %3059 = vmatpush3.bf16.msra.mxu0 %v3058_v17  ;;  %v1428_v19 = vld [vmem:[%s3935_s6] sm:$0x1] }
 0x382   : > { %3002 = vmatpush1.bf16.msra.mxu1 %v3001_v44  ;;  %2479 = vmatprep.mubr.msk.f32.mxu1 %vm1453_vm8, %v2160_v21 }
 0x383   : > { %3003 = vmatprep.subr.bf16.mxu1 %v3351_v58 }
 0x386   : > { %3005 = vmatpush1.bf16.msra.mxu1 %v3004_v22 }
 0x387   : > { %3006 = vmatprep.subr.bf16.mxu1 %v3351_v58 }
 0x38a   : > { %3008 = vmatpush1.bf16.msra.mxu1 %v3007_v43 }
 0x38b   : > { %3009 = vmatprep.subr.bf16.mxu1 %v3351_v58 }
 0x38e   : > { %3011 = vmatpush1.bf16.msra.mxu1 %v3010_v29 }
 0x38f   : > { %3012 = vmatprep.subr.bf16.mxu1 %v3351_v58 }
 0x392   : > { %3014 = vmatpush1.bf16.msra.mxu1 %v3013_v55 }
 0x393   : > { %3015 = vmatprep.subr.bf16.mxu1 %v3351_v58 }
 0x396   : > { %3017 = vmatpush1.bf16.msra.mxu1 %v3016_v33 }
 0x397   : > { %3018 = vmatprep.subr.bf16.mxu1 %v3351_v58 }
 0x39a   : > { %3020 = vmatpush1.bf16.msra.mxu1 %v3019_v5 }
 0x39b   : > { %3021 = vmatprep.subr.bf16.mxu1 %v3351_v58 }
 0x39e   : > { %3023 = vmatpush1.bf16.msra.mxu1 %v3022_v38 }
 0x39f   : > { %3024 = vmatprep.subr.bf16.mxu1 %v3351_v58 }
 0x3a2   : > { %3026 = vmatpush1.bf16.msra.mxu1 %v3025_v62 }
 0x3a3   : > { %3027 = vmatprep.subr.bf16.mxu1 %v3351_v58 }
 0x3a6   : > { %3029 = vmatpush1.bf16.msra.mxu1 %v3028_v4 }
 0x3a7   : > { %3030 = vmatprep.subr.bf16.mxu1 %v3351_v58 }
 0x3aa   : > { %3032 = vmatpush1.bf16.msra.mxu1 %v3031_v56 }
 0x3ab   : > { %3033 = vmatprep.subr.bf16.mxu1 %v3351_v58 }
 0x3ae   : > { %3035 = vmatpush1.bf16.msra.mxu1 %v3034_v3 }
 0x3b1   : > { %2229 = vmatmul.mubr.f32.vlgmr.msra.gmra.mrb[4].mxu1 %v2159_v26 }
 0x421   : > { %v1726_v18 = vpop.f32.mrb[6].mxu0 }
 0x422   : > { %v1728_v44 = vpop.f32.mrb[7].mxu0  ;;  %v3060_v58 = vadd.f32 %v1726_v18, %v1428_v19 }
 0x484   : > { %v2230_v20 = vpop.f32.mrb[4].mxu1 }
 0x485   : > { %v3061_v15 = vadd.f32 %v3060_v58, %v2230_v20  ;;  %v2232_v21 = vpop.f32.mrb[5].mxu1 }
 0x487   : > { %v2235_v22 = vmax.f32 %v3061_v15, 0.0 }
 0x489   : > { %2534 = vmatmul.mubr.f32.vlgmr.msra.gmra.mrb[8].mxu0 %v2235_v22 }
 0x55c   : > { %v2319_v24 = vpop.f32.mrb[8].mxu0 }
 0x55d   : > { %v2320_v43 = vadd.f32 %v2319_v24, %v2252_v23  ;;  %v2535_v25 = vpop.f32.mrb[9].mxu0 }
 0x55f   : > { %v2323_v0 = vmul.f32 %v2320_v43, %v2320_v43 }
 0x561   : > { %v2325_v28 = vsel %vm2324_vm10, %v2323_v0, 0.0 }
 0x562   : > { %2326 = vadd.xlane.f32.xlu0 %v2325_v28 }
 0x5ef   : > { %v2327_v29 = vpop.xlane.xlu0 %2326 }
 0x5f0   : > { %3183 = vrsqrt.f32 %v2327_v29  ;;  %vm2330_vm11 = vcmp.eq.f32.partialorder %v2327_v29, inf  ;;  %v2333_v55 = vand.u32 2147483648, %v2327_v29  ;;  %vm2332_vm12 = vcmp.eq.f32.partialorder %v2327_v29, 0.0 }
 0x5fa   : > { %v3184_v12 = vpop.eup %3183 }
 0x5fb   : > { %v2329_v30 = vmul.f32 %v3184_v12, %v2327_v29 }
 0x5fd   : > { %v2331_v6 = vsel %vm2330_vm11, %v2327_v29, %v2329_v30 }
 0x5fe   : > { %v2334_v32 = vsel %vm2332_vm12, %v2333_v55, %v2331_v6 }
 0x5ff   : > { %v2335_v33 = vmax.f32 %v2334_v32, 1e-12 }
 0x601   : > { %3185 = vrcp.f32 %v2335_v33 }
 0x60b   : > { %v3186_v53 = vpop.eup %3185 }
 0x60c   : > { %v2337_v34 = vmul.f32 %v3186_v53, %v2320_v43 }
 0x60e   : > { %2338 = vst.msk [vmem:[%s368_s26] sm:$0x1] %vm2324_vm10, %v2337_v34 }
 0x60f   : > { %3284 = shalt.err (!%p3281_p9)
}
 0x610   : > { %s3285_s15 = scalar_lea.hbm %s3886_s18, 16  ;;  %s3289_s22 = scalar_lea.hbm %s3938_s9, 32 }
 0x611   : > { %p3286_p2 = scmp.ne.s32.totalorder %s3886_s18, %s3285_s15  ;;  %p3290_p5 = scmp.lt.u32.totalorder %s3886_s18, %s3938_s9 }
 0x612   : > { %p3291_p10 = scmp.lt.u32.totalorder %s3289_s22, %s3285_s15  ;;  %p3293_p4 = scmp.lt.u32.totalorder %s3285_s15, %s3886_s18 }
 0x613   : > { %p3287_p3 = pnand %p3286_p2, %p3962_p7 }
 0x614   : > { %p3292_p12 = por %p3291_p10, %p3290_p5 }
 0x615   : > { %p3288_p0 = pneg %p3287_p3 }
 0x616   : > { %p3294_p8 = por %p3293_p4, %p3292_p12 }
 0x618   : > { %p3295_p11 = pnand %p3294_p8, %p3288_p0 }
 0x61a   : > { %3298 = shalt.err (!%p3295_p11)
}
 0x61b   : > { %3118 = dma.vmem_to_hbm [thread:$0]  (%p3962_p7), %s3888_s14, 16, %s3886_s18, %s2340_s21  }
 0x61c PF: > { %s3963_s29 = sld [smem:[#allocation12_spill]]  ;;  %s3964_s23 = sld [smem:[#allocation16_spill]] }
 0x61d   : > { %p3140_p13 = scmp.ge.s32.totalorder %s3341_s12, 2 }
 0x622   : > { %s2364_s26 = sand.u32 1, %s3963_s29   ;;  %p3965_p1 = scmp.ne.s32.totalorder %s3964_s23, 0 }
 0x623   : > { %s2365_s16 = scalar_lea.sflag [#allocation4], %s2364_s26 }
 0x624   : > { %p3131_p6 = pnand %p3140_p13, %p3965_p1 }
 0x626   : > { %3324 = dma.done.wait (!%p3131_p6), %s2365_s16, 16  }
 0x627   : > { %3326 = vsyncadd (!%p3131_p6), %s2365_s16, 4294967280  ;;  %s3966_s12 = sld [smem:[#allocation14_spill]]  ;;  %s3967_s24 = sld [smem:[#allocation13_spill]] }
 0x628   : > { %s3968_s11 = sld [smem:[#allocation15_spill]]  ;;  %s3969_s30 = smov %s3333_s10 }
 0x62d   : > { %p21_p9 = scmp.ge.s32.totalorder %s3966_s12, 4   ;;  %s3970_s10 = smov %s3967_s24 }
 0x62f   :  { %23 = sbr.rel (!%p21_p9) target bundleno = 5 (0x5), region = 117 }
 0x636   :  { %2369 = vsyncpa [#allocation3], 1 }
 0x637   :  { %2371 = vsyncpa [#allocation3 + $0x1], 1 }
 0x638   :  { %2372 = vsyncpa [#allocation6], 1 }
 0x639   :  { %2373 = vsyncpa [#allocation4], 1 }
 0x63a   :  { %2375 = vsyncpa [#allocation4 + $0x1], 1 }

</bundles_post_ra>
